<compile_context>
chip_gen: v7x
topology: tpu7x:2x2x1
jax: 0.10.0
libtpu: 0.0.40
codegen_flags: <defaults>
</compile_context>

<pallas_src>
import jax
import jax.numpy as jnp
from jax import lax
from jax.experimental import pallas as pl
from jax.experimental.pallas import tpu as pltpu


_SUBLANE = 8
_LANE = 128


def _round_up(x, m):
    return ((x + m - 1) // m) * m


def _choose_block_b(batch):
    """Batch tile: whole (padded) batch for small B; 128-wide lane-dense tiles
    (unmasked output stores, grid >= 2 -> both v7x TensorCores) once padded B >= 256."""
    bp = _round_up(batch, _SUBLANE)
    if bp >= 2 * _LANE:
        return _LANE
    return bp


# ----------------------------- Pallas kernel --------------------------------


def bi_attn_kernel(
    x2_ref,      # (T, BB, 2D)  time-major input, x2[t] = [x[t] | x[T-1-t]]
    w_in_ref,    # (2D, 8H)     block-structured fused input->gate weight, both dirs
    b_in_ref,    # (1, 8H)      fused gate bias (b_ih + b_hh, both dirs), cols [I|F|O|G]
    w_rec_ref,   # (2H, 8H)     block-diagonal recurrent weight, both dirs
    wa_ref,      # (2H, 2H)     attention weight, pre-transposed
    vec_ref,     # (4, 2H)      rows: [attn bias, ln gamma, ln beta, fc weight]
    bf_ref,      # (1, 1)       fc bias
    out_ref,     # (T, BB)      time-major, lane-dense output
    gpre_ref,    # scratch VMEM (T, BB, 8H): hoisted, pre-merged gate pre-activations
    h_ref,       # scratch VMEM (T, BB, 2H): un-interleaved hidden states (rnn_output)
):
    T, BB, D2 = x2_ref.shape
    G8 = w_in_ref.shape[1]          # 8H
    H2 = w_rec_ref.shape[0]         # 2H
    H = H2 // 2

    # ---- 1. hoisted input projection: ONE (T*BB, 2D) x (2D, 8H) MXU matmul emitting
    #         pre-merged (fwd uses t, bwd uses T-1-t) gate pre-activations -------------
    x2d = x2_ref[...].reshape(T * BB, D2)
    gpre_ref[...] = (
        jnp.dot(x2d, w_in_ref[...], preferred_element_type=jnp.float32)
        + b_in_ref[...]
    ).reshape(T, BB, G8)

    w_rec = w_rec_ref[...]

    # ---- 2. fused fwd+bwd recurrence, fully unrolled (T small & static) --------------
    # h = [h_fwd(t) | h_bwd(T-1-t)], c likewise; ONE (BB,2H)x(2H,8H) matmul per step.
    # (For large T, replace with lax.fori_loop + pl.ds indexing to bound vreg pressure.)
    h = jnp.zeros((BB, H2), jnp.float32)
    c = jnp.zeros((BB, H2), jnp.float32)
    for t in range(T):
        pre = gpre_ref[t] + jnp.dot(h, w_rec, preferred_element_type=jnp.float32)
        sig = jax.nn.sigmoid(pre[:, : 3 * H2])     # [i | f | o], both directions
        g_g = jnp.tanh(pre[:, 3 * H2:])            # cell gate, both directions
        i_g = sig[:, :H2]
        f_g = sig[:, H2:2 * H2]
        o_g = sig[:, 2 * H2:3 * H2]
        c = f_g * c + i_g * g_g
        h = o_g * jnp.tanh(c)
        # un-interleave on the fly: fwd(t) -> row t, bwd(T-1-t) -> row T-1-t
        h_ref[t, :, 0:H] = h[:, 0:H]
        h_ref[T - 1 - t, :, H:H2] = h[:, H:H2]

    rnn = h_ref[...]                               # (T, BB, 2H) == torch rnn_output

    # ---- 3. attention: Linear(2H->2H), softmax over the sequence axis (axis 0) -------
    ba = vec_ref[0:1, :].reshape(1, 1, H2)
    attn = jnp.dot(
        rnn.reshape(T * BB, H2), wa_ref[...], preferred_element_type=jnp.float32
    ).reshape(T, BB, H2) + ba
    m = jnp.max(attn, axis=0, keepdims=True)
    e = jnp.exp(attn - m)
    attn_w = e / jnp.sum(e, axis=0, keepdims=True)

    # ---- 4. residual + LayerNorm over features ---------------------------------------
    gamma = vec_ref[1:2, :].reshape(1, 1, H2)
    beta = vec_ref[2:3, :].reshape(1, 1, H2)
    y = attn_w * rnn + rnn
    mean = jnp.mean(y, axis=-1, keepdims=True)
    var = jnp.mean((y - mean) ** 2, axis=-1, keepdims=True)
    y_ln = (y - mean) * lax.rsqrt(var + 1e-5) * gamma + beta

    # ---- 5. fc (2H -> 1) as VPU multiply + lane reduction; time-major lane-dense store
    wf = vec_ref[3:4, :].reshape(1, 1, H2)
    out_ref[...] = jnp.sum(y_ln * wf, axis=-1) + bf_ref[...]


# ----------------------------- wrapper (weight prep + pallas_call) ----------


def _gate_blocks(w, H):
    """torch weight (4H, in), rows [i,f,g,o] -> transposed column blocks (i, f, o, g)."""
    wt = w.T                                            # (in, 4H)
    return wt[:, 0:H], wt[:, H:2 * H], wt[:, 3 * H:4 * H], wt[:, 2 * H:3 * H]


def _bias_blocks(b, H):
    return b[0:H], b[H:2 * H], b[3 * H:4 * H], b[2 * H:3 * H]


def _prepare_params(p):
    H = p["w_hh_f"].shape[1]
    D = p["w_ih_f"].shape[1]
    f32 = jnp.float32
    zD = jnp.zeros((D, H), f32)
    zH = jnp.zeros((H, H), f32)

    i_f, f_f, o_f, g_f = _gate_blocks(p["w_ih_f"].astype(f32), H)       # (D, H) each
    i_b, f_b, o_b, g_b = _gate_blocks(p["w_ih_b"].astype(f32), H)
    # block-structured fused input weight for the pre-merged input x2[t] = [x[t] | x[T-1-t]]
    #   rows 0:D  -> forward-gate columns, rows D:2D -> backward-gate columns
    # gate column order: [I_f I_b | F_f F_b | O_f O_b | G_f G_b]
    w_in = jnp.concatenate([
        jnp.concatenate([i_f, zD, f_f, zD, o_f, zD, g_f, zD], axis=1),
        jnp.concatenate([zD, i_b, zD, f_b, zD, o_b, zD, g_b], axis=1),
    ], axis=0)                                                          # (2D, 8H)

    bi_f, bf_f, bo_f, bg_f = _bias_blocks((p["b_ih_f"] + p["b_hh_f"]).astype(f32), H)
    bi_b, bf_b, bo_b, bg_b = _bias_blocks((p["b_ih_b"] + p["b_hh_b"]).astype(f32), H)
    b_in = jnp.concatenate(
        [bi_f, bi_b, bf_f, bf_b, bo_f, bo_b, bg_f, bg_b]).reshape(1, 8 * H)

    ri_f, rf_f, ro_f, rg_f = _gate_blocks(p["w_hh_f"].astype(f32), H)   # (H, H) each
    ri_b, rf_b, ro_b, rg_b = _gate_blocks(p["w_hh_b"].astype(f32), H)
    # block-diagonal recurrent weight: rows 0:H <- h_fwd, rows H:2H <- h_bwd
    w_rec = jnp.concatenate([
        jnp.concatenate([ri_f, zH, rf_f, zH, ro_f, zH, rg_f, zH], axis=1),
        jnp.concatenate([zH, ri_b, zH, rf_b, zH, ro_b, zH, rg_b], axis=1),
    ], axis=0)                                                          # (2H, 8H)

    vec = jnp.stack([
        p["b_attn"].astype(f32),
        p["ln_gamma"].astype(f32),
        p["ln_beta"].astype(f32),
        p["w_fc"].astype(f32).reshape(-1),
    ], axis=0)                                                          # (4, 2H)

    return dict(
        w_in=w_in, b_in=b_in, w_rec=w_rec,
        wa=p["w_attn"].astype(f32).T,
        vec=vec,
        bf=p["b_fc"].astype(f32).reshape(1, 1),
    )


@jax.jit
def bi_attention_classifier(x, params):
    """x: (B, T, D) batch-first float32 -> (B, T, 1), matching the PyTorch module."""
    B, T, D = x.shape
    H = params["w_hh_f"].shape[1]
    prep = _prepare_params(params)

    block_b = _choose_block_b(B)
    Bp = _round_up(B, block_b)
    x_p = jnp.pad(x.astype(jnp.float32), ((0, Bp - B), (0, 0), (0, 0)))
    x_tm = jnp.transpose(x_p, (1, 0, 2))                                # (T, Bp, D)
    # pre-merged input: x2[t] = [x[t] | x[T-1-t]] -> both directions' gate
    # pre-activations fall out of the one hoisted matmul (no select in the serial loop)
    x2 = jnp.concatenate([x_tm, jnp.flip(x_tm, axis=0)], axis=-1)       # (T, Bp, 2D)

    grid = (Bp // block_b,)

    def bcast_spec(arr):
        n = arr.ndim
        return pl.BlockSpec(arr.shape, lambda b, n=n: (0,) * n)

    out = pl.pallas_call(
        bi_attn_kernel,
        out_shape=jax.ShapeDtypeStruct((T, Bp), jnp.float32),
        grid=grid,
        in_specs=[
            pl.BlockSpec((T, block_b, 2 * D), lambda b: (0, b, 0)),
            bcast_spec(prep["w_in"]),
            bcast_spec(prep["b_in"]),
            bcast_spec(prep["w_rec"]),
            bcast_spec(prep["wa"]),
            bcast_spec(prep["vec"]),
            bcast_spec(prep["bf"]),
        ],
        out_specs=pl.BlockSpec((T, block_b), lambda b: (0, b)),
        scratch_shapes=[
            pltpu.VMEM((T, block_b, 8 * H), jnp.float32),
            pltpu.VMEM((T, block_b, 2 * H), jnp.float32),
        ],
        compiler_params=pltpu.CompilerParams(
            dimension_semantics=("parallel",),
            vmem_limit_bytes=32 * 1024 * 1024,
        ),
    )(x2, prep["w_in"], prep["b_in"], prep["w_rec"], prep["wa"],
      prep["vec"], prep["bf"])

    return jnp.transpose(out)[:B, :, None]                              # (B, T, 1)


# ----------------------------- pure-JAX reference ----------------------------


def reference_forward(x, p):
    B, T, D = x.shape
    H = p["w_hh_f"].shape[1]

    def lstm_dir(w_ih, w_hh, b_ih, b_hh, reverse):
        h = jnp.zeros((B, H), jnp.float32)
        c = jnp.zeros((B, H), jnp.float32)
        outs = [None] * T
        order = range(T - 1, -1, -1) if reverse else range(T)
        for t in order:
            gates = x[:, t] @ w_ih.T + b_ih + h @ w_hh.T + b_hh
            i_g = jax.nn.sigmoid(gates[:, :H])
            f_g = jax.nn.sigmoid(gates[:, H:2 * H])
            g_g = jnp.tanh(gates[:, 2 * H:3 * H])
            o_g = jax.nn.sigmoid(gates[:, 3 * H:])
            c = f_g * c + i_g * g_g
            h = o_g * jnp.tanh(c)
            outs[t] = h
        return jnp.stack(outs, axis=1)                                   # (B, T, H)

    fwd = lstm_dir(p["w_ih_f"], p["w_hh_f"], p["b_ih_f"], p["b_hh_f"], False)
    bwd = lstm_dir(p["w_ih_b"], p["w_hh_b"], p["b_ih_b"], p["b_hh_b"], True)
    rnn_out = jnp.concatenate([fwd, bwd], axis=-1)                       # (B, T, 2H)

    attn = rnn_out @ p["w_attn"].T + p["b_attn"]
    attn_w = jax.nn.softmax(attn, axis=1)                                # softmax over seq
    attended = attn_w * rnn_out

    y = attended + rnn_out
    mean = jnp.mean(y, axis=-1, keepdims=True)
    var = jnp.mean((y - mean) ** 2, axis=-1, keepdims=True)
    y_ln = (y - mean) / jnp.sqrt(var + 1e-5) * p["ln_gamma"] + p["ln_beta"]

    return y_ln @ p["w_fc"].T + p["b_fc"]                                # (B, T, 1)


# ----------------------------- main -------------------------------------------


def make_params(key, input_size, hidden_size):
    H = hidden_size
    bound = 1.0 / (H ** 0.5)
    keys = jax.random.split(key, 16)
    u = lambda k, shape: jax.random.uniform(k, shape, jnp.float32, -bound, bound)
    return {
        "w_ih_f": u(keys[0], (4 * H, input_size)),
        "w_hh_f": u(keys[1], (4 * H, H)),
        "b_ih_f": u(keys[2], (4 * H,)),
        "b_hh_f": u(keys[3], (4 * H,)),
        "w_ih_b": u(keys[4], (4 * H, input_size)),
        "w_hh_b": u(keys[5], (4 * H, H)),
        "b_ih_b": u(keys[6], (4 * H,)),
        "b_hh_b": u(keys[7], (4 * H,)),
        "w_attn": u(keys[8], (2 * H, 2 * H)),
        "b_attn": u(keys[9], (2 * H,)),
        "ln_gamma": jnp.ones((2 * H,), jnp.float32),
        "ln_beta": jnp.zeros((2 * H,), jnp.float32),
        "w_fc": u(keys[10], (1, 2 * H)),
        "b_fc": u(keys[11], (1,)),
    }


if __name__ == "__main__":
    B, T, D, H = 2, 8, 16, 32

    key = jax.random.PRNGKey(0)
    kx, kp = jax.random.split(key)
    x = jax.random.normal(kx, (B, T, D), jnp.float32)
    params = make_params(kp, D, H)

    out = jax.block_until_ready(bi_attention_classifier(x, params))
    ref = jax.block_until_ready(reference_forward(x, params))

    assert out.shape == (B, T, 1), out.shape
    assert jnp.allclose(out, ref, atol=1e-4, rtol=1e-4), (
        float(jnp.max(jnp.abs(out - ref)))
    )
    print("KERNEL_OK")
</pallas_src>

<mosaic_0001>
module attributes {stable_mosaic.version = 11 : i64} {
  func.func @bi_attn_kernel(%arg0: i32, %arg1: memref<8x8x32xf32, #tpu.memory_space<vmem>>, %arg2: memref<32x256xf32, #tpu.memory_space<vmem>>, %arg3: memref<1x256xf32, #tpu.memory_space<vmem>>, %arg4: memref<64x256xf32, #tpu.memory_space<vmem>>, %arg5: memref<64x64xf32, #tpu.memory_space<vmem>>, %arg6: memref<4x64xf32, #tpu.memory_space<vmem>>, %arg7: memref<1x1xf32, #tpu.memory_space<vmem>>, %arg8: memref<8x8xf32, #tpu.memory_space<vmem>>, %arg9: memref<8x8x256xf32, #tpu.memory_space<vmem>>, %arg10: memref<8x8x64xf32, #tpu.memory_space<vmem>>) attributes {dimension_semantics = [#tpu.dimension_semantics<parallel>], iteration_bounds = array<i64: 1>, scalar_prefetch = 0 : i64, scratch_operands = 2 : i64, tpu.core_type = #tpu.core_type<tc>, window_params = [{transform_indices = @transform_0, window_bounds = array<i64: 8, 8, 32>}, {pipeline_mode = #tpu.pipeline_mode<synchronous>, transform_indices = @transform_1, window_bounds = array<i64: 32, 256>}, {pipeline_mode = #tpu.pipeline_mode<synchronous>, transform_indices = @transform_2, window_bounds = array<i64: 1, 256>}, {pipeline_mode = #tpu.pipeline_mode<synchronous>, transform_indices = @transform_3, window_bounds = array<i64: 64, 256>}, {pipeline_mode = #tpu.pipeline_mode<synchronous>, transform_indices = @transform_4, window_bounds = array<i64: 64, 64>}, {pipeline_mode = #tpu.pipeline_mode<synchronous>, transform_indices = @transform_5, window_bounds = array<i64: 4, 64>}, {pipeline_mode = #tpu.pipeline_mode<synchronous>, transform_indices = @transform_6, window_bounds = array<i64: 1, 1>}, {transform_indices = @transform_7, window_bounds = array<i64: 8, 8>}]} {
    %c0 = arith.constant 0 : index
    %c0_0 = arith.constant 0 : index
    %c0_1 = arith.constant 0 : index
    %0 = vector.load %arg1[%c0, %c0_0, %c0_1] : memref<8x8x32xf32, #tpu.memory_space<vmem>>, vector<8x8x32xf32>
    %1 = vector.shape_cast %0 : vector<8x8x32xf32> to vector<64x32xf32>
    %c0_2 = arith.constant 0 : index
    %c0_3 = arith.constant 0 : index
    %2 = vector.load %arg2[%c0_2, %c0_3] : memref<32x256xf32, #tpu.memory_space<vmem>>, vector<32x256xf32>
    %cst = arith.constant dense<0.000000e+00> : vector<64x256xf32>
    %3 = tpu.matmul %1, %2, %cst {dimension_numbers = #tpu.dot_dimension_numbers<[1], [0], [0], [1], [0, 0, 1, 1], [], []>} : vector<64x32xf32>, vector<32x256xf32>, vector<64x256xf32> -> vector<64x256xf32>
    %c0_4 = arith.constant 0 : index
    %c0_5 = arith.constant 0 : index
    %4 = vector.load %arg3[%c0_4, %c0_5] : memref<1x256xf32, #tpu.memory_space<vmem>>, vector<1x256xf32>
    %5 = vector.broadcast %4 : vector<1x256xf32> to vector<64x256xf32>
    %6 = arith.addf %3, %5 : vector<64x256xf32>
    %7 = vector.shape_cast %6 : vector<64x256xf32> to vector<8x8x256xf32>
    %c0_6 = arith.constant 0 : index
    %c0_7 = arith.constant 0 : index
    %c0_8 = arith.constant 0 : index
    %8 = vector.load %arg9[%c0_6, %c0_7, %c0_8] : memref<8x8x256xf32, #tpu.memory_space<vmem>>, vector<8x8x256xf32>
    tpu.vector_store %arg9[%c0_6, %c0_7, %c0_8], %7 {strides = array<i32>} : memref<8x8x256xf32, #tpu.memory_space<vmem>>, vector<8x8x256xf32>,
    %c0_9 = arith.constant 0 : index
    %c0_10 = arith.constant 0 : index
    %9 = vector.load %arg4[%c0_9, %c0_10] : memref<64x256xf32, #tpu.memory_space<vmem>>, vector<64x256xf32>
    %cst_11 = arith.constant 0.000000e+00 : f32
    %10 = vector.broadcast %cst_11 : f32 to vector<8x64xf32>
    %cst_12 = arith.constant 0.000000e+00 : f32
    %11 = vector.broadcast %cst_12 : f32 to vector<8x64xf32>
    %c0_13 = arith.constant 0 : index
    %c0_14 = arith.constant 0 : index
    %c0_15 = arith.constant 0 : index
    %12 = vector.load %arg9[%c0_13, %c0_14, %c0_15] : memref<8x8x256xf32, #tpu.memory_space<vmem>>, vector<1x8x256xf32>
    %13 = vector.shape_cast %12 : vector<1x8x256xf32> to vector<8x256xf32>
    %cst_16 = arith.constant dense<0.000000e+00> : vector<8x256xf32>
    %14 = tpu.matmul %10, %9, %cst_16 {dimension_numbers = #tpu.dot_dimension_numbers<[1], [0], [0], [1], [0, 0, 1, 1], [], []>} : vector<8x64xf32>, vector<64x256xf32>, vector<8x256xf32> -> vector<8x256xf32>
    %15 = arith.addf %13, %14 : vector<8x256xf32>
    %16 = vector.extract_strided_slice %15 {offsets = [0, 0], sizes = [8, 192], strides = [1, 1]} : vector<8x256xf32> to vector<8x192xf32>
    %17 = arith.negf %16 : vector<8x192xf32>
    %18 = math.exp %17 : vector<8x192xf32>
    %cst_17 = arith.constant 1.000000e+00 : f32
    %19 = vector.broadcast %cst_17 : f32 to vector<8x192xf32>
    %20 = arith.addf %19, %18 : vector<8x192xf32>
    %21 = arith.divf %19, %20 : vector<8x192xf32>
    %22 = vector.extract_strided_slice %15 {offsets = [0, 192], sizes = [8, 64], strides = [1, 1]} : vector<8x256xf32> to vector<8x64xf32>
    %23 = math.tanh %22 : vector<8x64xf32>
    %24 = vector.extract_strided_slice %21 {offsets = [0, 0], sizes = [8, 64], strides = [1, 1]} : vector<8x192xf32> to vector<8x64xf32>
    %25 = vector.extract_strided_slice %21 {offsets = [0, 64], sizes = [8, 64], strides = [1, 1]} : vector<8x192xf32> to vector<8x64xf32>
    %26 = vector.extract_strided_slice %21 {offsets = [0, 128], sizes = [8, 64], strides = [1, 1]} : vector<8x192xf32> to vector<8x64xf32>
    %27 = arith.mulf %25, %11 : vector<8x64xf32>
    %28 = arith.mulf %24, %23 : vector<8x64xf32>
    %29 = arith.addf %27, %28 : vector<8x64xf32>
    %30 = math.tanh %29 : vector<8x64xf32>
    %31 = arith.mulf %26, %30 : vector<8x64xf32>
    %32 = vector.extract_strided_slice %31 {offsets = [0, 0], sizes = [8, 32], strides = [1, 1]} : vector<8x64xf32> to vector<8x32xf32>
    %c0_18 = arith.constant 0 : index
    %c0_19 = arith.constant 0 : index
    %c0_20 = arith.constant 0 : index
    %33 = vector.load %arg10[%c0_18, %c0_19, %c0_20] : memref<8x8x64xf32, #tpu.memory_space<vmem>>, vector<1x8x32xf32>
    %34 = vector.shape_cast %33 : vector<1x8x32xf32> to vector<8x32xf32>
    %35 = vector.shape_cast %32 : vector<8x32xf32> to vector<1x8x32xf32>
    tpu.vector_store %arg10[%c0_18, %c0_19, %c0_20], %35 {strides = array<i32>} : memref<8x8x64xf32, #tpu.memory_space<vmem>>, vector<1x8x32xf32>,
    %36 = vector.extract_strided_slice %31 {offsets = [0, 32], sizes = [8, 32], strides = [1, 1]} : vector<8x64xf32> to vector<8x32xf32>
    %c7 = arith.constant 7 : index
    %c0_21 = arith.constant 0 : index
    %c32 = arith.constant 32 : index
    %37 = vector.load %arg10[%c7, %c0_21, %c32] : memref<8x8x64xf32, #tpu.memory_space<vmem>>, vector<1x8x32xf32>
    %38 = vector.shape_cast %37 : vector<1x8x32xf32> to vector<8x32xf32>
    %39 = vector.shape_cast %36 : vector<8x32xf32> to vector<1x8x32xf32>
    tpu.vector_store %arg10[%c7, %c0_21, %c32], %39 {strides = array<i32>} : memref<8x8x64xf32, #tpu.memory_space<vmem>>, vector<1x8x32xf32>,
    %c1 = arith.constant 1 : index
    %c0_22 = arith.constant 0 : index
    %c0_23 = arith.constant 0 : index
    %40 = vector.load %arg9[%c1, %c0_22, %c0_23] : memref<8x8x256xf32, #tpu.memory_space<vmem>>, vector<1x8x256xf32>
    %41 = vector.shape_cast %40 : vector<1x8x256xf32> to vector<8x256xf32>
    %cst_24 = arith.constant dense<0.000000e+00> : vector<8x256xf32>
    %42 = tpu.matmul %31, %9, %cst_24 {dimension_numbers = #tpu.dot_dimension_numbers<[1], [0], [0], [1], [0, 0, 1, 1], [], []>} : vector<8x64xf32>, vector<64x256xf32>, vector<8x256xf32> -> vector<8x256xf32>
    %43 = arith.addf %41, %42 : vector<8x256xf32>
    %44 = vector.extract_strided_slice %43 {offsets = [0, 0], sizes = [8, 192], strides = [1, 1]} : vector<8x256xf32> to vector<8x192xf32>
    %45 = arith.negf %44 : vector<8x192xf32>
    %46 = math.exp %45 : vector<8x192xf32>
    %cst_25 = arith.constant 1.000000e+00 : f32
    %47 = vector.broadcast %cst_25 : f32 to vector<8x192xf32>
    %48 = arith.addf %47, %46 : vector<8x192xf32>
    %49 = arith.divf %47, %48 : vector<8x192xf32>
    %50 = vector.extract_strided_slice %43 {offsets = [0, 192], sizes = [8, 64], strides = [1, 1]} : vector<8x256xf32> to vector<8x64xf32>
    %51 = math.tanh %50 : vector<8x64xf32>
    %52 = vector.extract_strided_slice %49 {offsets = [0, 0], sizes = [8, 64], strides = [1, 1]} : vector<8x192xf32> to vector<8x64xf32>
    %53 = vector.extract_strided_slice %49 {offsets = [0, 64], sizes = [8, 64], strides = [1, 1]} : vector<8x192xf32> to vector<8x64xf32>
    %54 = vector.extract_strided_slice %49 {offsets = [0, 128], sizes = [8, 64], strides = [1, 1]} : vector<8x192xf32> to vector<8x64xf32>
    %55 = arith.mulf %53, %29 : vector<8x64xf32>
    %56 = arith.mulf %52, %51 : vector<8x64xf32>
    %57 = arith.addf %55, %56 : vector<8x64xf32>
    %58 = math.tanh %57 : vector<8x64xf32>
    %59 = arith.mulf %54, %58 : vector<8x64xf32>
    %60 = vector.extract_strided_slice %59 {offsets = [0, 0], sizes = [8, 32], strides = [1, 1]} : vector<8x64xf32> to vector<8x32xf32>
    %c1_26 = arith.constant 1 : index
    %c0_27 = arith.constant 0 : index
    %c0_28 = arith.constant 0 : index
    %61 = vector.load %arg10[%c1_26, %c0_27, %c0_28] : memref<8x8x64xf32, #tpu.memory_space<vmem>>, vector<1x8x32xf32>
    %62 = vector.shape_cast %61 : vector<1x8x32xf32> to vector<8x32xf32>
    %63 = vector.shape_cast %60 : vector<8x32xf32> to vector<1x8x32xf32>
    tpu.vector_store %arg10[%c1_26, %c0_27, %c0_28], %63 {strides = array<i32>} : memref<8x8x64xf32, #tpu.memory_space<vmem>>, vector<1x8x32xf32>,
    %64 = vector.extract_strided_slice %59 {offsets = [0, 32], sizes = [8, 32], strides = [1, 1]} : vector<8x64xf32> to vector<8x32xf32>
    %c6 = arith.constant 6 : index
    %c0_29 = arith.constant 0 : index
    %c32_30 = arith.constant 32 : index
    %65 = vector.load %arg10[%c6, %c0_29, %c32_30] : memref<8x8x64xf32, #tpu.memory_space<vmem>>, vector<1x8x32xf32>
    %66 = vector.shape_cast %65 : vector<1x8x32xf32> to vector<8x32xf32>
    %67 = vector.shape_cast %64 : vector<8x32xf32> to vector<1x8x32xf32>
    tpu.vector_store %arg10[%c6, %c0_29, %c32_30], %67 {strides = array<i32>} : memref<8x8x64xf32, #tpu.memory_space<vmem>>, vector<1x8x32xf32>,
    %c2 = arith.constant 2 : index
    %c0_31 = arith.constant 0 : index
    %c0_32 = arith.constant 0 : index
    %68 = vector.load %arg9[%c2, %c0_31, %c0_32] : memref<8x8x256xf32, #tpu.memory_space<vmem>>, vector<1x8x256xf32>
    %69 = vector.shape_cast %68 : vector<1x8x256xf32> to vector<8x256xf32>
    %cst_33 = arith.constant dense<0.000000e+00> : vector<8x256xf32>
    %70 = tpu.matmul %59, %9, %cst_33 {dimension_numbers = #tpu.dot_dimension_numbers<[1], [0], [0], [1], [0, 0, 1, 1], [], []>} : vector<8x64xf32>, vector<64x256xf32>, vector<8x256xf32> -> vector<8x256xf32>
    %71 = arith.addf %69, %70 : vector<8x256xf32>
    %72 = vector.extract_strided_slice %71 {offsets = [0, 0], sizes = [8, 192], strides = [1, 1]} : vector<8x256xf32> to vector<8x192xf32>
    %73 = arith.negf %72 : vector<8x192xf32>
    %74 = math.exp %73 : vector<8x192xf32>
    %cst_34 = arith.constant 1.000000e+00 : f32
    %75 = vector.broadcast %cst_34 : f32 to vector<8x192xf32>
    %76 = arith.addf %75, %74 : vector<8x192xf32>
    %77 = arith.divf %75, %76 : vector<8x192xf32>
    %78 = vector.extract_strided_slice %71 {offsets = [0, 192], sizes = [8, 64], strides = [1, 1]} : vector<8x256xf32> to vector<8x64xf32>
    %79 = math.tanh %78 : vector<8x64xf32>
    %80 = vector.extract_strided_slice %77 {offsets = [0, 0], sizes = [8, 64], strides = [1, 1]} : vector<8x192xf32> to vector<8x64xf32>
    %81 = vector.extract_strided_slice %77 {offsets = [0, 64], sizes = [8, 64], strides = [1, 1]} : vector<8x192xf32> to vector<8x64xf32>
    %82 = vector.extract_strided_slice %77 {offsets = [0, 128], sizes = [8, 64], strides = [1, 1]} : vector<8x192xf32> to vector<8x64xf32>
    %83 = arith.mulf %81, %57 : vector<8x64xf32>
    %84 = arith.mulf %80, %79 : vector<8x64xf32>
    %85 = arith.addf %83, %84 : vector<8x64xf32>
    %86 = math.tanh %85 : vector<8x64xf32>
    %87 = arith.mulf %82, %86 : vector<8x64xf32>
    %88 = vector.extract_strided_slice %87 {offsets = [0, 0], sizes = [8, 32], strides = [1, 1]} : vector<8x64xf32> to vector<8x32xf32>
    %c2_35 = arith.constant 2 : index
    %c0_36 = arith.constant 0 : index
    %c0_37 = arith.constant 0 : index
    %89 = vector.load %arg10[%c2_35, %c0_36, %c0_37] : memref<8x8x64xf32, #tpu.memory_space<vmem>>, vector<1x8x32xf32>
    %90 = vector.shape_cast %89 : vector<1x8x32xf32> to vector<8x32xf32>
    %91 = vector.shape_cast %88 : vector<8x32xf32> to vector<1x8x32xf32>
    tpu.vector_store %arg10[%c2_35, %c0_36, %c0_37], %91 {strides = array<i32>} : memref<8x8x64xf32, #tpu.memory_space<vmem>>, vector<1x8x32xf32>,
    %92 = vector.extract_strided_slice %87 {offsets = [0, 32], sizes = [8, 32], strides = [1, 1]} : vector<8x64xf32> to vector<8x32xf32>
    %c5 = arith.constant 5 : index
    %c0_38 = arith.constant 0 : index
    %c32_39 = arith.constant 32 : index
    %93 = vector.load %arg10[%c5, %c0_38, %c32_39] : memref<8x8x64xf32, #tpu.memory_space<vmem>>, vector<1x8x32xf32>
    %94 = vector.shape_cast %93 : vector<1x8x32xf32> to vector<8x32xf32>
    %95 = vector.shape_cast %92 : vector<8x32xf32> to vector<1x8x32xf32>
    tpu.vector_store %arg10[%c5, %c0_38, %c32_39], %95 {strides = array<i32>} : memref<8x8x64xf32, #tpu.memory_space<vmem>>, vector<1x8x32xf32>,
    %c3 = arith.constant 3 : index
    %c0_40 = arith.constant 0 : index
    %c0_41 = arith.constant 0 : index
    %96 = vector.load %arg9[%c3, %c0_40, %c0_41] : memref<8x8x256xf32, #tpu.memory_space<vmem>>, vector<1x8x256xf32>
    %97 = vector.shape_cast %96 : vector<1x8x256xf32> to vector<8x256xf32>
    %cst_42 = arith.constant dense<0.000000e+00> : vector<8x256xf32>
    %98 = tpu.matmul %87, %9, %cst_42 {dimension_numbers = #tpu.dot_dimension_numbers<[1], [0], [0], [1], [0, 0, 1, 1], [], []>} : vector<8x64xf32>, vector<64x256xf32>, vector<8x256xf32> -> vector<8x256xf32>
    %99 = arith.addf %97, %98 : vector<8x256xf32>
    %100 = vector.extract_strided_slice %99 {offsets = [0, 0], sizes = [8, 192], strides = [1, 1]} : vector<8x256xf32> to vector<8x192xf32>
    %101 = arith.negf %100 : vector<8x192xf32>
    %102 = math.exp %101 : vector<8x192xf32>
    %cst_43 = arith.constant 1.000000e+00 : f32
    %103 = vector.broadcast %cst_43 : f32 to vector<8x192xf32>
    %104 = arith.addf %103, %102 : vector<8x192xf32>
    %105 = arith.divf %103, %104 : vector<8x192xf32>
    %106 = vector.extract_strided_slice %99 {offsets = [0, 192], sizes = [8, 64], strides = [1, 1]} : vector<8x256xf32> to vector<8x64xf32>
    %107 = math.tanh %106 : vector<8x64xf32>
    %108 = vector.extract_strided_slice %105 {offsets = [0, 0], sizes = [8, 64], strides = [1, 1]} : vector<8x192xf32> to vector<8x64xf32>
    %109 = vector.extract_strided_slice %105 {offsets = [0, 64], sizes = [8, 64], strides = [1, 1]} : vector<8x192xf32> to vector<8x64xf32>
    %110 = vector.extract_strided_slice %105 {offsets = [0, 128], sizes = [8, 64], strides = [1, 1]} : vector<8x192xf32> to vector<8x64xf32>
    %111 = arith.mulf %109, %85 : vector<8x64xf32>
    %112 = arith.mulf %108, %107 : vector<8x64xf32>
    %113 = arith.addf %111, %112 : vector<8x64xf32>
    %114 = math.tanh %113 : vector<8x64xf32>
    %115 = arith.mulf %110, %114 : vector<8x64xf32>
    %116 = vector.extract_strided_slice %115 {offsets = [0, 0], sizes = [8, 32], strides = [1, 1]} : vector<8x64xf32> to vector<8x32xf32>
    %c3_44 = arith.constant 3 : index
    %c0_45 = arith.constant 0 : index
    %c0_46 = arith.constant 0 : index
    %117 = vector.load %arg10[%c3_44, %c0_45, %c0_46] : memref<8x8x64xf32, #tpu.memory_space<vmem>>, vector<1x8x32xf32>
    %118 = vector.shape_cast %117 : vector<1x8x32xf32> to vector<8x32xf32>
    %119 = vector.shape_cast %116 : vector<8x32xf32> to vector<1x8x32xf32>
    tpu.vector_store %arg10[%c3_44, %c0_45, %c0_46], %119 {strides = array<i32>} : memref<8x8x64xf32, #tpu.memory_space<vmem>>, vector<1x8x32xf32>,
    %120 = vector.extract_strided_slice %115 {offsets = [0, 32], sizes = [8, 32], strides = [1, 1]} : vector<8x64xf32> to vector<8x32xf32>
    %c4 = arith.constant 4 : index
    %c0_47 = arith.constant 0 : index
    %c32_48 = arith.constant 32 : index
    %121 = vector.load %arg10[%c4, %c0_47, %c32_48] : memref<8x8x64xf32, #tpu.memory_space<vmem>>, vector<1x8x32xf32>
    %122 = vector.shape_cast %121 : vector<1x8x32xf32> to vector<8x32xf32>
    %123 = vector.shape_cast %120 : vector<8x32xf32> to vector<1x8x32xf32>
    tpu.vector_store %arg10[%c4, %c0_47, %c32_48], %123 {strides = array<i32>} : memref<8x8x64xf32, #tpu.memory_space<vmem>>, vector<1x8x32xf32>,
    %c4_49 = arith.constant 4 : index
    %c0_50 = arith.constant 0 : index
    %c0_51 = arith.constant 0 : index
    %124 = vector.load %arg9[%c4_49, %c0_50, %c0_51] : memref<8x8x256xf32, #tpu.memory_space<vmem>>, vector<1x8x256xf32>
    %125 = vector.shape_cast %124 : vector<1x8x256xf32> to vector<8x256xf32>
    %cst_52 = arith.constant dense<0.000000e+00> : vector<8x256xf32>
    %126 = tpu.matmul %115, %9, %cst_52 {dimension_numbers = #tpu.dot_dimension_numbers<[1], [0], [0], [1], [0, 0, 1, 1], [], []>} : vector<8x64xf32>, vector<64x256xf32>, vector<8x256xf32> -> vector<8x256xf32>
    %127 = arith.addf %125, %126 : vector<8x256xf32>
    %128 = vector.extract_strided_slice %127 {offsets = [0, 0], sizes = [8, 192], strides = [1, 1]} : vector<8x256xf32> to vector<8x192xf32>
    %129 = arith.negf %128 : vector<8x192xf32>
    %130 = math.exp %129 : vector<8x192xf32>
    %cst_53 = arith.constant 1.000000e+00 : f32
    %131 = vector.broadcast %cst_53 : f32 to vector<8x192xf32>
    %132 = arith.addf %131, %130 : vector<8x192xf32>
    %133 = arith.divf %131, %132 : vector<8x192xf32>
    %134 = vector.extract_strided_slice %127 {offsets = [0, 192], sizes = [8, 64], strides = [1, 1]} : vector<8x256xf32> to vector<8x64xf32>
    %135 = math.tanh %134 : vector<8x64xf32>
    %136 = vector.extract_strided_slice %133 {offsets = [0, 0], sizes = [8, 64], strides = [1, 1]} : vector<8x192xf32> to vector<8x64xf32>
    %137 = vector.extract_strided_slice %133 {offsets = [0, 64], sizes = [8, 64], strides = [1, 1]} : vector<8x192xf32> to vector<8x64xf32>
    %138 = vector.extract_strided_slice %133 {offsets = [0, 128], sizes = [8, 64], strides = [1, 1]} : vector<8x192xf32> to vector<8x64xf32>
    %139 = arith.mulf %137, %113 : vector<8x64xf32>
    %140 = arith.mulf %136, %135 : vector<8x64xf32>
    %141 = arith.addf %139, %140 : vector<8x64xf32>
    %142 = math.tanh %141 : vector<8x64xf32>
    %143 = arith.mulf %138, %142 : vector<8x64xf32>
    %144 = vector.extract_strided_slice %143 {offsets = [0, 0], sizes = [8, 32], strides = [1, 1]} : vector<8x64xf32> to vector<8x32xf32>
    %c4_54 = arith.constant 4 : index
    %c0_55 = arith.constant 0 : index
    %c0_56 = arith.constant 0 : index
    %145 = vector.load %arg10[%c4_54, %c0_55, %c0_56] : memref<8x8x64xf32, #tpu.memory_space<vmem>>, vector<1x8x32xf32>
    %146 = vector.shape_cast %145 : vector<1x8x32xf32> to vector<8x32xf32>
    %147 = vector.shape_cast %144 : vector<8x32xf32> to vector<1x8x32xf32>
    tpu.vector_store %arg10[%c4_54, %c0_55, %c0_56], %147 {strides = array<i32>} : memref<8x8x64xf32, #tpu.memory_space<vmem>>, vector<1x8x32xf32>,
    %148 = vector.extract_strided_slice %143 {offsets = [0, 32], sizes = [8, 32], strides = [1, 1]} : vector<8x64xf32> to vector<8x32xf32>
    %c3_57 = arith.constant 3 : index
    %c0_58 = arith.constant 0 : index
    %c32_59 = arith.constant 32 : index
    %149 = vector.load %arg10[%c3_57, %c0_58, %c32_59] : memref<8x8x64xf32, #tpu.memory_space<vmem>>, vector<1x8x32xf32>
    %150 = vector.shape_cast %149 : vector<1x8x32xf32> to vector<8x32xf32>
    %151 = vector.shape_cast %148 : vector<8x32xf32> to vector<1x8x32xf32>
    tpu.vector_store %arg10[%c3_57, %c0_58, %c32_59], %151 {strides = array<i32>} : memref<8x8x64xf32, #tpu.memory_space<vmem>>, vector<1x8x32xf32>,
    %c5_60 = arith.constant 5 : index
    %c0_61 = arith.constant 0 : index
    %c0_62 = arith.constant 0 : index
    %152 = vector.load %arg9[%c5_60, %c0_61, %c0_62] : memref<8x8x256xf32, #tpu.memory_space<vmem>>, vector<1x8x256xf32>
    %153 = vector.shape_cast %152 : vector<1x8x256xf32> to vector<8x256xf32>
    %cst_63 = arith.constant dense<0.000000e+00> : vector<8x256xf32>
    %154 = tpu.matmul %143, %9, %cst_63 {dimension_numbers = #tpu.dot_dimension_numbers<[1], [0], [0], [1], [0, 0, 1, 1], [], []>} : vector<8x64xf32>, vector<64x256xf32>, vector<8x256xf32> -> vector<8x256xf32>
    %155 = arith.addf %153, %154 : vector<8x256xf32>
    %156 = vector.extract_strided_slice %155 {offsets = [0, 0], sizes = [8, 192], strides = [1, 1]} : vector<8x256xf32> to vector<8x192xf32>
    %157 = arith.negf %156 : vector<8x192xf32>
    %158 = math.exp %157 : vector<8x192xf32>
    %cst_64 = arith.constant 1.000000e+00 : f32
    %159 = vector.broadcast %cst_64 : f32 to vector<8x192xf32>
    %160 = arith.addf %159, %158 : vector<8x192xf32>
    %161 = arith.divf %159, %160 : vector<8x192xf32>
    %162 = vector.extract_strided_slice %155 {offsets = [0, 192], sizes = [8, 64], strides = [1, 1]} : vector<8x256xf32> to vector<8x64xf32>
    %163 = math.tanh %162 : vector<8x64xf32>
    %164 = vector.extract_strided_slice %161 {offsets = [0, 0], sizes = [8, 64], strides = [1, 1]} : vector<8x192xf32> to vector<8x64xf32>
    %165 = vector.extract_strided_slice %161 {offsets = [0, 64], sizes = [8, 64], strides = [1, 1]} : vector<8x192xf32> to vector<8x64xf32>
    %166 = vector.extract_strided_slice %161 {offsets = [0, 128], sizes = [8, 64], strides = [1, 1]} : vector<8x192xf32> to vector<8x64xf32>
    %167 = arith.mulf %165, %141 : vector<8x64xf32>
    %168 = arith.mulf %164, %163 : vector<8x64xf32>
    %169 = arith.addf %167, %168 : vector<8x64xf32>
    %170 = math.tanh %169 : vector<8x64xf32>
    %171 = arith.mulf %166, %170 : vector<8x64xf32>
    %172 = vector.extract_strided_slice %171 {offsets = [0, 0], sizes = [8, 32], strides = [1, 1]} : vector<8x64xf32> to vector<8x32xf32>
    %c5_65 = arith.constant 5 : index
    %c0_66 = arith.constant 0 : index
    %c0_67 = arith.constant 0 : index
    %173 = vector.load %arg10[%c5_65, %c0_66, %c0_67] : memref<8x8x64xf32, #tpu.memory_space<vmem>>, vector<1x8x32xf32>
    %174 = vector.shape_cast %173 : vector<1x8x32xf32> to vector<8x32xf32>
    %175 = vector.shape_cast %172 : vector<8x32xf32> to vector<1x8x32xf32>
    tpu.vector_store %arg10[%c5_65, %c0_66, %c0_67], %175 {strides = array<i32>} : memref<8x8x64xf32, #tpu.memory_space<vmem>>, vector<1x8x32xf32>,
    %176 = vector.extract_strided_slice %171 {offsets = [0, 32], sizes = [8, 32], strides = [1, 1]} : vector<8x64xf32> to vector<8x32xf32>
    %c2_68 = arith.constant 2 : index
    %c0_69 = arith.constant 0 : index
    %c32_70 = arith.constant 32 : index
    %177 = vector.load %arg10[%c2_68, %c0_69, %c32_70] : memref<8x8x64xf32, #tpu.memory_space<vmem>>, vector<1x8x32xf32>
    %178 = vector.shape_cast %177 : vector<1x8x32xf32> to vector<8x32xf32>
    %179 = vector.shape_cast %176 : vector<8x32xf32> to vector<1x8x32xf32>
    tpu.vector_store %arg10[%c2_68, %c0_69, %c32_70], %179 {strides = array<i32>} : memref<8x8x64xf32, #tpu.memory_space<vmem>>, vector<1x8x32xf32>,
    %c6_71 = arith.constant 6 : index
    %c0_72 = arith.constant 0 : index
    %c0_73 = arith.constant 0 : index
    %180 = vector.load %arg9[%c6_71, %c0_72, %c0_73] : memref<8x8x256xf32, #tpu.memory_space<vmem>>, vector<1x8x256xf32>
    %181 = vector.shape_cast %180 : vector<1x8x256xf32> to vector<8x256xf32>
    %cst_74 = arith.constant dense<0.000000e+00> : vector<8x256xf32>
    %182 = tpu.matmul %171, %9, %cst_74 {dimension_numbers = #tpu.dot_dimension_numbers<[1], [0], [0], [1], [0, 0, 1, 1], [], []>} : vector<8x64xf32>, vector<64x256xf32>, vector<8x256xf32> -> vector<8x256xf32>
    %183 = arith.addf %181, %182 : vector<8x256xf32>
    %184 = vector.extract_strided_slice %183 {offsets = [0, 0], sizes = [8, 192], strides = [1, 1]} : vector<8x256xf32> to vector<8x192xf32>
    %185 = arith.negf %184 : vector<8x192xf32>
    %186 = math.exp %185 : vector<8x192xf32>
    %cst_75 = arith.constant 1.000000e+00 : f32
    %187 = vector.broadcast %cst_75 : f32 to vector<8x192xf32>
    %188 = arith.addf %187, %186 : vector<8x192xf32>
    %189 = arith.divf %187, %188 : vector<8x192xf32>
    %190 = vector.extract_strided_slice %183 {offsets = [0, 192], sizes = [8, 64], strides = [1, 1]} : vector<8x256xf32> to vector<8x64xf32>
    %191 = math.tanh %190 : vector<8x64xf32>
    %192 = vector.extract_strided_slice %189 {offsets = [0, 0], sizes = [8, 64], strides = [1, 1]} : vector<8x192xf32> to vector<8x64xf32>
    %193 = vector.extract_strided_slice %189 {offsets = [0, 64], sizes = [8, 64], strides = [1, 1]} : vector<8x192xf32> to vector<8x64xf32>
    %194 = vector.extract_strided_slice %189 {offsets = [0, 128], sizes = [8, 64], strides = [1, 1]} : vector<8x192xf32> to vector<8x64xf32>
    %195 = arith.mulf %193, %169 : vector<8x64xf32>
    %196 = arith.mulf %192, %191 : vector<8x64xf32>
    %197 = arith.addf %195, %196 : vector<8x64xf32>
    %198 = math.tanh %197 : vector<8x64xf32>
    %199 = arith.mulf %194, %198 : vector<8x64xf32>
    %200 = vector.extract_strided_slice %199 {offsets = [0, 0], sizes = [8, 32], strides = [1, 1]} : vector<8x64xf32> to vector<8x32xf32>
    %c6_76 = arith.constant 6 : index
    %c0_77 = arith.constant 0 : index
    %c0_78 = arith.constant 0 : index
    %201 = vector.load %arg10[%c6_76, %c0_77, %c0_78] : memref<8x8x64xf32, #tpu.memory_space<vmem>>, vector<1x8x32xf32>
    %202 = vector.shape_cast %201 : vector<1x8x32xf32> to vector<8x32xf32>
    %203 = vector.shape_cast %200 : vector<8x32xf32> to vector<1x8x32xf32>
    tpu.vector_store %arg10[%c6_76, %c0_77, %c0_78], %203 {strides = array<i32>} : memref<8x8x64xf32, #tpu.memory_space<vmem>>, vector<1x8x32xf32>,
    %204 = vector.extract_strided_slice %199 {offsets = [0, 32], sizes = [8, 32], strides = [1, 1]} : vector<8x64xf32> to vector<8x32xf32>
    %c1_79 = arith.constant 1 : index
    %c0_80 = arith.constant 0 : index
    %c32_81 = arith.constant 32 : index
    %205 = vector.load %arg10[%c1_79, %c0_80, %c32_81] : memref<8x8x64xf32, #tpu.memory_space<vmem>>, vector<1x8x32xf32>
    %206 = vector.shape_cast %205 : vector<1x8x32xf32> to vector<8x32xf32>
    %207 = vector.shape_cast %204 : vector<8x32xf32> to vector<1x8x32xf32>
    tpu.vector_store %arg10[%c1_79, %c0_80, %c32_81], %207 {strides = array<i32>} : memref<8x8x64xf32, #tpu.memory_space<vmem>>, vector<1x8x32xf32>,
    %c7_82 = arith.constant 7 : index
    %c0_83 = arith.constant 0 : index
    %c0_84 = arith.constant 0 : index
    %208 = vector.load %arg9[%c7_82, %c0_83, %c0_84] : memref<8x8x256xf32, #tpu.memory_space<vmem>>, vector<1x8x256xf32>
    %209 = vector.shape_cast %208 : vector<1x8x256xf32> to vector<8x256xf32>
    %cst_85 = arith.constant dense<0.000000e+00> : vector<8x256xf32>
    %210 = tpu.matmul %199, %9, %cst_85 {dimension_numbers = #tpu.dot_dimension_numbers<[1], [0], [0], [1], [0, 0, 1, 1], [], []>} : vector<8x64xf32>, vector<64x256xf32>, vector<8x256xf32> -> vector<8x256xf32>
    %211 = arith.addf %209, %210 : vector<8x256xf32>
    %212 = vector.extract_strided_slice %211 {offsets = [0, 0], sizes = [8, 192], strides = [1, 1]} : vector<8x256xf32> to vector<8x192xf32>
    %213 = arith.negf %212 : vector<8x192xf32>
    %214 = math.exp %213 : vector<8x192xf32>
    %cst_86 = arith.constant 1.000000e+00 : f32
    %215 = vector.broadcast %cst_86 : f32 to vector<8x192xf32>
    %216 = arith.addf %215, %214 : vector<8x192xf32>
    %217 = arith.divf %215, %216 : vector<8x192xf32>
    %218 = vector.extract_strided_slice %211 {offsets = [0, 192], sizes = [8, 64], strides = [1, 1]} : vector<8x256xf32> to vector<8x64xf32>
    %219 = math.tanh %218 : vector<8x64xf32>
    %220 = vector.extract_strided_slice %217 {offsets = [0, 0], sizes = [8, 64], strides = [1, 1]} : vector<8x192xf32> to vector<8x64xf32>
    %221 = vector.extract_strided_slice %217 {offsets = [0, 64], sizes = [8, 64], strides = [1, 1]} : vector<8x192xf32> to vector<8x64xf32>
    %222 = vector.extract_strided_slice %217 {offsets = [0, 128], sizes = [8, 64], strides = [1, 1]} : vector<8x192xf32> to vector<8x64xf32>
    %223 = arith.mulf %221, %197 : vector<8x64xf32>
    %224 = arith.mulf %220, %219 : vector<8x64xf32>
    %225 = arith.addf %223, %224 : vector<8x64xf32>
    %226 = math.tanh %225 : vector<8x64xf32>
    %227 = arith.mulf %222, %226 : vector<8x64xf32>
    %228 = vector.extract_strided_slice %227 {offsets = [0, 0], sizes = [8, 32], strides = [1, 1]} : vector<8x64xf32> to vector<8x32xf32>
    %c7_87 = arith.constant 7 : index
    %c0_88 = arith.constant 0 : index
    %c0_89 = arith.constant 0 : index
    %229 = vector.load %arg10[%c7_87, %c0_88, %c0_89] : memref<8x8x64xf32, #tpu.memory_space<vmem>>, vector<1x8x32xf32>
    %230 = vector.shape_cast %229 : vector<1x8x32xf32> to vector<8x32xf32>
    %231 = vector.shape_cast %228 : vector<8x32xf32> to vector<1x8x32xf32>
    tpu.vector_store %arg10[%c7_87, %c0_88, %c0_89], %231 {strides = array<i32>} : memref<8x8x64xf32, #tpu.memory_space<vmem>>, vector<1x8x32xf32>,
    %232 = vector.extract_strided_slice %227 {offsets = [0, 32], sizes = [8, 32], strides = [1, 1]} : vector<8x64xf32> to vector<8x32xf32>
    %c0_90 = arith.constant 0 : index
    %c0_91 = arith.constant 0 : index
    %c32_92 = arith.constant 32 : index
    %233 = vector.load %arg10[%c0_90, %c0_91, %c32_92] : memref<8x8x64xf32, #tpu.memory_space<vmem>>, vector<1x8x32xf32>
    %234 = vector.shape_cast %233 : vector<1x8x32xf32> to vector<8x32xf32>
    %235 = vector.shape_cast %232 : vector<8x32xf32> to vector<1x8x32xf32>
    tpu.vector_store %arg10[%c0_90, %c0_91, %c32_92], %235 {strides = array<i32>} : memref<8x8x64xf32, #tpu.memory_space<vmem>>, vector<1x8x32xf32>,
    %c0_93 = arith.constant 0 : index
    %c0_94 = arith.constant 0 : index
    %c0_95 = arith.constant 0 : index
    %236 = vector.load %arg10[%c0_93, %c0_94, %c0_95] : memref<8x8x64xf32, #tpu.memory_space<vmem>>, vector<8x8x64xf32>
    %c0_96 = arith.constant 0 : index
    %c0_97 = arith.constant 0 : index
    %237 = vector.load %arg6[%c0_96, %c0_97] : memref<4x64xf32, #tpu.memory_space<vmem>>, vector<1x64xf32>
    %238 = vector.shape_cast %237 : vector<1x64xf32> to vector<1x1x64xf32>
    %239 = vector.shape_cast %236 : vector<8x8x64xf32> to vector<64x64xf32>
    %c0_98 = arith.constant 0 : index
    %c0_99 = arith.constant 0 : index
    %240 = vector.load %arg5[%c0_98, %c0_99] : memref<64x64xf32, #tpu.memory_space<vmem>>, vector<64x64xf32>
    %cst_100 = arith.constant dense<0.000000e+00> : vector<64x64xf32>
    %241 = tpu.matmul %239, %240, %cst_100 {dimension_numbers = #tpu.dot_dimension_numbers<[1], [0], [0], [1], [0, 0, 1, 1], [], []>} : vector<64x64xf32>, vector<64x64xf32>, vector<64x64xf32> -> vector<64x64xf32>
    %242 = vector.shape_cast %241 : vector<64x64xf32> to vector<8x8x64xf32>
    %243 = vector.broadcast %238 : vector<1x1x64xf32> to vector<8x8x64xf32>
    %244 = arith.addf %242, %243 : vector<8x8x64xf32>
    %cst_101 = arith.constant dense<0xFF800000> : vector<8x64xf32>
    %245 = vector.multi_reduction <maximumf>, %244, %cst_101 [0] : vector<8x8x64xf32> to vector<8x64xf32>
    %246 = vector.shape_cast %245 : vector<8x64xf32> to vector<1x8x64xf32>
    %247 = vector.broadcast %246 : vector<1x8x64xf32> to vector<8x8x64xf32>
    %248 = arith.subf %244, %247 : vector<8x8x64xf32>
    %249 = math.exp %248 : vector<8x8x64xf32>
    %cst_102 = arith.constant dense<0.000000e+00> : vector<8x64xf32>
    %250 = vector.multi_reduction <add>, %249, %cst_102 [0] : vector<8x8x64xf32> to vector<8x64xf32>
    %251 = vector.shape_cast %250 : vector<8x64xf32> to vector<1x8x64xf32>
    %252 = vector.broadcast %251 : vector<1x8x64xf32> to vector<8x8x64xf32>
    %253 = arith.divf %249, %252 : vector<8x8x64xf32>
    %c1_103 = arith.constant 1 : index
    %c0_104 = arith.constant 0 : index
    %254 = vector.load %arg6[%c1_103, %c0_104] : memref<4x64xf32, #tpu.memory_space<vmem>>, vector<1x64xf32>
    %255 = vector.shape_cast %254 : vector<1x64xf32> to vector<1x1x64xf32>
    %c2_105 = arith.constant 2 : index
    %c0_106 = arith.constant 0 : index
    %256 = vector.load %arg6[%c2_105, %c0_106] : memref<4x64xf32, #tpu.memory_space<vmem>>, vector<1x64xf32>
    %257 = vector.shape_cast %256 : vector<1x64xf32> to vector<1x1x64xf32>
    %258 = arith.mulf %253, %236 : vector<8x8x64xf32>
    %259 = arith.addf %258, %236 : vector<8x8x64xf32>
    %cst_107 = arith.constant dense<0.000000e+00> : vector<8x8xf32>
    %260 = vector.multi_reduction <add>, %259, %cst_107 [2] : vector<8x8x64xf32> to vector<8x8xf32>
    %261 = vector.shape_cast %260 : vector<8x8xf32> to vector<8x8x1xf32>
    %cst_108 = arith.constant 6.400000e+01 : f32
    %262 = vector.broadcast %cst_108 : f32 to vector<8x8x1xf32>
    %263 = arith.divf %261, %262 : vector<8x8x1xf32>
    %264 = vector.broadcast %263 : vector<8x8x1xf32> to vector<8x8x64xf32>
    %265 = arith.subf %259, %264 : vector<8x8x64xf32>
    %266 = arith.mulf %265, %265 : vector<8x8x64xf32>
    %cst_109 = arith.constant dense<0.000000e+00> : vector<8x8xf32>
    %267 = vector.multi_reduction <add>, %266, %cst_109 [2] : vector<8x8x64xf32> to vector<8x8xf32>
    %268 = vector.shape_cast %267 : vector<8x8xf32> to vector<8x8x1xf32>
    %cst_110 = arith.constant 6.400000e+01 : f32
    %269 = vector.broadcast %cst_110 : f32 to vector<8x8x1xf32>
    %270 = arith.divf %268, %269 : vector<8x8x1xf32>
    %271 = vector.broadcast %263 : vector<8x8x1xf32> to vector<8x8x64xf32>
    %272 = arith.subf %259, %271 : vector<8x8x64xf32>
    %cst_111 = arith.constant 9.99999974E-6 : f32
    %273 = vector.broadcast %cst_111 : f32 to vector<8x8x1xf32>
    %274 = arith.addf %270, %273 : vector<8x8x1xf32>
    %275 = math.rsqrt %274 : vector<8x8x1xf32>
    %276 = vector.broadcast %275 : vector<8x8x1xf32> to vector<8x8x64xf32>
    %277 = arith.mulf %272, %276 : vector<8x8x64xf32>
    %278 = vector.broadcast %255 : vector<1x1x64xf32> to vector<8x8x64xf32>
    %279 = arith.mulf %277, %278 : vector<8x8x64xf32>
    %280 = vector.broadcast %257 : vector<1x1x64xf32> to vector<8x8x64xf32>
    %281 = arith.addf %279, %280 : vector<8x8x64xf32>
    %c3_112 = arith.constant 3 : index
    %c0_113 = arith.constant 0 : index
    %282 = vector.load %arg6[%c3_112, %c0_113] : memref<4x64xf32, #tpu.memory_space<vmem>>, vector<1x64xf32>
    %283 = vector.shape_cast %282 : vector<1x64xf32> to vector<1x1x64xf32>
    %284 = vector.broadcast %283 : vector<1x1x64xf32> to vector<8x8x64xf32>
    %285 = arith.mulf %281, %284 : vector<8x8x64xf32>
    %cst_114 = arith.constant dense<0.000000e+00> : vector<8x8xf32>
    %286 = vector.multi_reduction <add>, %285, %cst_114 [2] : vector<8x8x64xf32> to vector<8x8xf32>
    %c0_115 = arith.constant 0 : index
    %c0_116 = arith.constant 0 : index
    %287 = vector.load %arg7[%c0_115, %c0_116] : memref<1x1xf32, #tpu.memory_space<vmem>>, vector<1x1xf32>
    %288 = vector.broadcast %287 : vector<1x1xf32> to vector<8x8xf32>
    %289 = arith.addf %286, %288 : vector<8x8xf32>
    %c0_117 = arith.constant 0 : index
    %c0_118 = arith.constant 0 : index
    %290 = vector.load %arg8[%c0_117, %c0_118] : memref<8x8xf32, #tpu.memory_space<vmem>>, vector<8x8xf32>
    tpu.vector_store %arg8[%c0_117, %c0_118], %289 {strides = array<i32>} : memref<8x8xf32, #tpu.memory_space<vmem>>, vector<8x8xf32>,
    return
  }
  func.func @transform_0(%arg0: i32) -> (i32, i32, i32) {
    %c0_i32 = arith.constant 0 : i32
    %c0_i32_0 = arith.constant 0 : i32
    %c0_i32_1 = arith.constant 0 : i32
    return %c0_i32, %arg0, %c0_i32_0 : i32, i32, i32
  }
  func.func @transform_1(%arg0: i32) -> (i32, i32) {
    %c0_i32 = arith.constant 0 : i32
    %c0_i32_0 = arith.constant 0 : i32
    %c0_i32_1 = arith.constant 0 : i32
    return %c0_i32, %c0_i32_0 : i32, i32
  }
  func.func @transform_2(%arg0: i32) -> (i32, i32) {
    %c0_i32 = arith.constant 0 : i32
    %c0_i32_0 = arith.constant 0 : i32
    %c0_i32_1 = arith.constant 0 : i32
    return %c0_i32, %c0_i32_0 : i32, i32
  }
  func.func @transform_3(%arg0: i32) -> (i32, i32) {
    %c0_i32 = arith.constant 0 : i32
    %c0_i32_0 = arith.constant 0 : i32
    %c0_i32_1 = arith.constant 0 : i32
    return %c0_i32, %c0_i32_0 : i32, i32
  }
  func.func @transform_4(%arg0: i32) -> (i32, i32) {
    %c0_i32 = arith.constant 0 : i32
    %c0_i32_0 = arith.constant 0 : i32
    %c0_i32_1 = arith.constant 0 : i32
    return %c0_i32, %c0_i32_0 : i32, i32
  }
  func.func @transform_5(%arg0: i32) -> (i32, i32) {
    %c0_i32 = arith.constant 0 : i32
    %c0_i32_0 = arith.constant 0 : i32
    %c0_i32_1 = arith.constant 0 : i32
    return %c0_i32, %c0_i32_0 : i32, i32
  }
  func.func @transform_6(%arg0: i32) -> (i32, i32) {
    %c0_i32 = arith.constant 0 : i32
    %c0_i32_0 = arith.constant 0 : i32
    %c0_i32_1 = arith.constant 0 : i32
    return %c0_i32, %c0_i32_0 : i32, i32
  }
  func.func @transform_7(%arg0: i32) -> (i32, i32) {
    %c0_i32 = arith.constant 0 : i32
    %c0_i32_0 = arith.constant 0 : i32
    return %c0_i32, %arg0 : i32, i32
  }
}

</mosaic_0001>

<bundles_post_ra>
// kernel: bi_attention_classifier.1
= control target key start
LH: loop header
LB: loop body
LE: loop exit
PB: predicated region body
PF: predicated region fallthrough
CT: control target
= control target key end

     0   :  { %v2015_v3 = vmov 0.0   ;;  %vm56_vm0 = vcmask 261120   ;;  %v46_v51 = vlaneseq  ;;  %s2016_s17 = smov 64   ;;  %vm337_vm1 = vcmask 523520   ;;  %s2542_s1 = inlined_call_operand.vmem [shape: f32[32,256], index: 1, kind: input, shape index: {}]   ;;  %s2543_s3 = inlined_call_operand.vmem [shape: f32[64,256], index: 3, kind: input, shape index: {}]   ;;  %s2544_s0 = inlined_call_operand.vmem [shape: f32[8,8,32], index: 0, kind: input, shape index: {}]   ;;  %s2545_s2 = inlined_call_operand.vmem [shape: f32[1,256], index: 2, kind: input, shape index: {}]   ;;  %s2546_s4 = inlined_call_operand.vmem [shape: f32[64,64], index: 4, kind: input, shape index: {}]   ;;  %s2547_s5 = inlined_call_operand.vmem [shape: f32[4,64], index: 5, kind: input, shape index: {}]   ;;  %s2548_s6 = inlined_call_operand.<no memory space> [shape: f32[1,1], index: 6, kind: input, shape index: {}]   ;;  %s2549_s7 = inlined_call_operand.vmem [shape: f32[8,8], index: 7, kind: output, shape index: {}]  }
   0x1   :  { %v37_v0 = vld [vmem:[%s2542_s1 + $0x8] sm:$0xff]  ;;  %v39_v1 = vld [vmem:[%s2542_s1 + $0x18] sm:$0xff]  ;;  %v36_v2 = vld [vmem:[%s2542_s1] sm:$0xff]  ;;  %145 = vmatprep.mubr.f32.mxu1 %v2015_v3  ;;  %522 = vmatprep.mubr.f32.mxu0 %v2015_v3  ;;  %vm228_vm2 = vcmask 523264   ;;  %vm1587_vm3 = vcmask 1041409   ;;  %vm1589_vm4 = vcmask 1042434  }
   0x2   :  { %v1696_v4 = vpack.c.bf16 %v39_v1, %v37_v0  ;;  %v38_v5 = vld [vmem:[%s2542_s1 + $0x10] sm:$0xff]  ;;  %v41_v6 = vld [vmem:[%s2542_s1 + $0x28] sm:$0xff]  ;;  %v43_v7 = vld [vmem:[%s2542_s1 + $0x38] sm:$0xff]  ;;  %v2232_v54 = vshrl.u32 %v46_v51, 7  ;;  %vm1591_vm5 = vcmask 1043459   ;;  %vm1593_vm6 = vcmask 1044484  }
   0x3   :  { %v1698_v8 = vpack.c.bf16 %v38_v5, %v36_v2  ;;  %v1700_v9 = vpack.c.bf16 %v43_v7, %v41_v6  ;;  %v40_v10 = vld [vmem:[%s2542_s1 + $0x20] sm:$0xff]  ;;  %v42_v11 = vld [vmem:[%s2542_s1 + $0x30] sm:$0xff]  ;;  %v211_v12 = vld [vmem:[%s2543_s3 + $0x8] sm:$0xff]  ;;  %vm1595_vm7 = vcmask 1045509   ;;  %vm1597_vm8 = vcmask 1046534  }
   0x4   :  { %1697 = vmatprep.subr.bf16.mxu1 %v1696_v4  ;;  %v213_v13 = vld [vmem:[%s2543_s3 + $0x18] sm:$0xff]  ;;  %v210_v14 = vld [vmem:[%s2543_s3] sm:$0xff]  ;;  %v1702_v15 = vpack.c.bf16 %v42_v11, %v40_v10  ;;  %v212_v17 = vld [vmem:[%s2543_s3 + $0x10] sm:$0xff]  ;;  %v52_v57 = vsub.s32 1, %v2232_v54  ;;  %v48_v2 = vsub.s32 0, %v2232_v54  ;;  %vm1599_vm9 = vcmask 1047559  }
   0x5   :  { %1699 = vmatpush1.bf16.msra.mxu1 %v1698_v8  ;;  %v2093_v16 = vpack.c.bf16 %v213_v13, %v211_v12  ;;  %v2098_v18 = vpack.c.bf16 %v212_v17, %v210_v14  ;;  %v215_v19 = vld [vmem:[%s2543_s3 + $0x28] sm:$0xff]  ;;  %v217_v20 = vld [vmem:[%s2543_s3 + $0x38] sm:$0xff]  ;;  %v214_v22 = vld [vmem:[%s2543_s3 + $0x20] sm:$0xff]  ;;  %vm1602_vm10 = vcmask 64512  }
   0x6   :  { %1701 = vmatprep.subr.bf16.mxu1 %v1700_v9  ;;  %v2106_v21 = vpack.c.bf16 %v217_v20, %v215_v19  ;;  %v216_v23 = vld [vmem:[%s2543_s3 + $0x30] sm:$0xff]  ;;  %v28_v24 = vld [vmem:[%s2544_s0] sm:$0xff]  ;;  %v219_v25 = vld [vmem:[%s2543_s3 + $0x48] sm:$0xff] }
   0x7   :  { %1737 = vmatprep.subr.bf16.mxu0 %v2093_v16  ;;  %v221_v26 = vld [vmem:[%s2543_s3 + $0x58] sm:$0xff]  ;;  %v2127_v27 = vpack.c.bf16 %v216_v23, %v214_v22  ;;  %v218_v28 = vld [vmem:[%s2543_s3 + $0x40] sm:$0xff]  ;;  %v220_v29 = vld [vmem:[%s2543_s3 + $0x50] sm:$0xff] }
   0x8   :  { %1739 = vmatpush1.bf16.msra.mxu0 %v2098_v18  ;;  %v2136_v30 = vpack.c.bf16 %v221_v26, %v219_v25  ;;  %v29_v31 = vld [vmem:[%s2544_s0 + $0x8] sm:$0xff]  ;;  %v225_v33 = vld [vmem:[%s2543_s3 + $0x78] sm:$0xff]  ;;  %v2151_v34 = vpack.c.bf16 %v220_v29, %v218_v28  ;;  %v222_v35 = vld [vmem:[%s2543_s3 + $0x60] sm:$0xff] }
   0x9   :  { %1703 = vmatpush1.bf16.msra.mxu1 %v1702_v15  ;;  %1741 = vmatprep.subr.bf16.mxu0 %v2106_v21  ;;  %v223_v32 = vld [vmem:[%s2543_s3 + $0x68] sm:$0xff]  ;;  %v224_v36 = vld [vmem:[%s2543_s3 + $0x70] sm:$0xff]  ;;  %v31_v40 = vld [vmem:[%s2544_s0 + $0x18] sm:$0xff] }
   0xa   :  { %1705 = vmatprep.subr.bf16.mxu1 %v2093_v16  ;;  %v2161_v37 = vpack.c.bf16 %v225_v33, %v223_v32  ;;  %v30_v38 = vld [vmem:[%s2544_s0 + $0x10] sm:$0xff]  ;;  %v2170_v39 = vpack.c.bf16 %v224_v36, %v222_v35  ;;  %v32_v41 = vld [vmem:[%s2544_s0 + $0x20] sm:$0xff]  ;;  %v33_v42 = vld [vmem:[%s2544_s0 + $0x28] sm:$0xff] }
   0xb   :  { %v34_v43 = vld [vmem:[%s2544_s0 + $0x30] sm:$0xff]  ;;  %v35_v44 = vld [vmem:[%s2544_s0 + $0x38] sm:$0xff]  ;;  %v44_v59 = vld [vmem:[%s2545_s2] sm:$0x3] }
   0xc   :  { %1608 = vmatmul.mubr.msk.f32.vlgmr.msra.gmra.mrb[0].mxu1 %vm56_vm0, %v28_v24  ;;  %1743 = vmatpush1.bf16.msra.mxu0 %v2127_v27  ;;  %v2246_v61 = vrot.slane %v44_v59, %v52_v57  ;;  %v2251_v4 = vrot.slane %v44_v59, %v48_v2 }
   0xd   :  { %1707 = vmatpush1.bf16.msra.mxu1 %v2098_v18  ;;  %151 = vmatprep.mubr.f32.mxu1 %v2015_v3 }
   0xe   :  { %1709 = vmatprep.subr.bf16.mxu1 %v2106_v21  ;;  %1745 = vmatprep.subr.bf16.mxu0 %v2136_v30 }
  0x10   :  { %1609 = vmatmul.mubr.msk.f32.gmra.mrb[2].mxu1 %vm56_vm0, %v29_v31  ;;  %1747 = vmatpush1.bf16.msra.mxu0 %v2151_v34 }
  0x11   :  { %157 = vmatprep.mubr.f32.mxu1 %v2015_v3  ;;  %1711 = vmatpush1.bf16.msra.mxu1 %v2127_v27 }
  0x12   :  { %1713 = vmatprep.subr.bf16.mxu1 %v2136_v30  ;;  %1749 = vmatprep.subr.bf16.mxu0 %v2161_v37 }
  0x14   :  { %1610 = vmatmul.mubr.msk.f32.gmra.mrb[4].mxu1 %vm56_vm0, %v30_v38  ;;  %1751 = vmatpush1.bf16.msra.mxu0 %v2170_v39 }
  0x15   :  { %163 = vmatprep.mubr.f32.mxu1 %v2015_v3  ;;  %1715 = vmatpush1.bf16.msra.mxu1 %v2151_v34 }
  0x16   :  { %1717 = vmatprep.subr.bf16.mxu1 %v2161_v37  ;;  %1753 = vmatprep.subr.bf16.mxu0 %v2093_v16 }
  0x18   :  { %1611 = vmatmul.mubr.msk.f32.gmra.mrb[6].mxu1 %vm56_vm0, %v31_v40 }
  0x19   :  { %169 = vmatprep.mubr.f32.mxu1 %v2015_v3  ;;  %1719 = vmatpush1.bf16.msra.mxu1 %v2170_v39 }
  0x1a   :  { %1721 = vmatprep.subr.bf16.mxu1 %v2093_v16 }
  0x1c   :  { %1612 = vmatmul.mubr.msk.f32.gmra.mrb[8].mxu1 %vm56_vm0, %v32_v41 }
  0x1d   :  { %175 = vmatprep.mubr.f32.mxu1 %v2015_v3 }
  0x20   :  { %1613 = vmatmul.mubr.msk.f32.gmra.mrb[10].mxu1 %vm56_vm0, %v33_v42 }
  0x21   :  { %181 = vmatprep.mubr.f32.mxu1 %v2015_v3 }
  0x24   :  { %1614 = vmatmul.mubr.msk.f32.gmra.mrb[12].mxu1 %vm56_vm0, %v34_v43 }
  0x25   :  { %187 = vmatprep.mubr.f32.mxu1 %v2015_v3 }
  0x28   :  { %1615 = vmatmul.mubr.msk.f32.gmra.mrb[14].mxu1 %vm56_vm0, %v35_v44 }
  0x29   :  { %296 = vmatprep.mubr.f32.mxu1 %v2015_v3 }
  0x2c   :  { %297 = vmatmul.mubr.f32.vlgmr.msra.gmra.mrb[0].mxu1 %v2015_v3 }
  0x2d   :  { %1723 = vmatpush1.bf16.msra.mxu1 %v2098_v18  ;;  %409 = vmatprep.mubr.f32.mxu1 %v2015_v3 }
  0x2e   :  { %1725 = vmatprep.subr.bf16.mxu1 %v2106_v21 }
  0x31   :  { %1727 = vmatpush1.bf16.msra.mxu1 %v2127_v27 }
  0x32   :  { %1729 = vmatprep.subr.bf16.mxu1 %v2136_v30 }
  0x35   :  { %1731 = vmatpush1.bf16.msra.mxu1 %v2151_v34 }
  0x36   :  { %1733 = vmatprep.subr.bf16.mxu1 %v2161_v37 }
  0x39   :  { %1735 = vmatpush1.bf16.msra.mxu1 %v2170_v39 }
  0xe7   :  { %v2215_v45 = vpop.f32.mrb[4].mxu1 }
  0xe8   :  { %v2217_v46 = vpop.f32.mrb[5].mxu1  ;;  %v160_v2 = vadd.f32 %v2215_v45, %v2251_v4 }
  0xeb   :  { %v2219_v47 = vpop.f32.mrb[6].mxu1 }
  0xec   :  { %v2221_v48 = vpop.f32.mrb[7].mxu1 }
  0xef   :  { %v2223_v49 = vpop.f32.mrb[8].mxu1 }
  0xf0   :  { %v2225_v50 = vpop.f32.mrb[9].mxu1 }
  0xf3   :  { %v2227_v52 = vpop.f32.mrb[10].mxu1 }
  0xf4   :  { %v2229_v53 = vpop.f32.mrb[11].mxu1 }
  0xf7   :  { %v2234_v55 = vpop.f32.mrb[12].mxu1 }
  0xf8   :  { %v2236_v56 = vpop.f32.mrb[13].mxu1 }
  0xfb   :  { %v2239_v58 = vpop.f32.mrb[14].mxu1 }
  0xfc   :  { %v2244_v60 = vpop.f32.mrb[15].mxu1 }
  0xff   :  { %v298_v62 = vpop.f32.mrb[0].mxu1 }
 0x100   :  { %v300_v63 = vpop.f32.mrb[1].mxu1  ;;  %v1848_v5 = vadd.f32 %v298_v62, %v2251_v4 }
 0x101   :  { %v1849_v0 = vadd.f32 %v300_v63, %v2246_v61 }
 0x102   :  { %v1616_v6 = vmul.f32 -1.442695, %v1848_v5  ;;  %v162_v5 = vadd.f32 %v2217_v46, %v2246_v61 }
 0x103   :  { %1885 = vtanh.f32 %v1849_v0  ;;  %v1617_v17 = vmul.f32 -1.442695, %v1849_v0 }
 0x104   :  { %1887 = vpow2.f32 %v1616_v6 }
 0x10d   :  { %v1886_v1 = vpop.eup %1885 }
 0x10e   :  { %320 = vrot.lane.b32.xlu0 %v1886_v1, %s2016_s17  ;;  %v1888_v7 = vpop.eup %1887 }
 0x10f   :  { %v311_v8 = vadd.f32 1.0, %v1888_v7 }
 0x111   :  { %1889 = vrcp.f32 %v311_v8 }
 0x11b   :  { %v1890_v9 = vpop.eup %1889 }
 0x11c   :  { %v318_v12 = vmul.f32 0.0, %v1890_v9 }
 0x180   :  { %v321_v10 = vpop.permute.xlu0 %320 }
 0x181   :  { %v323_v11 = vmul.f32 %v1890_v9, %v321_v10 }
 0x183   :  { %325 = vrot.lane.b32.xlu0 %v323_v11, %s2016_s17 }
 0x1f5   :  { %v326_v13 = vpop.permute.xlu0 %325 }
 0x1f6   :  { %v328_v14 = vadd.f32 %v326_v13, %v318_v12 }
 0x1f8   :  { %1891 = vtanh.f32 %v328_v14 }
 0x1f9   :  { %1893 = vpow2.f32 %v1617_v17 }
 0x202   :  { %v1892_v15 = vpop.eup %1891 }
 0x203   :  { %331 = vrot.lane.b32.xlu1 %v1892_v15, %s2016_s17  ;;  %v1894_v19 = vpop.eup %1893 }
 0x204   :  { %v312_v20 = vadd.f32 1.0, %v1894_v19 }
 0x206   :  { %1895 = vrcp.f32 %v312_v20 }
 0x210   :  { %v1896_v22 = vpop.eup %1895 }
 0x275   :  { %v332_v23 = vpop.permute.xlu1 %331 }
 0x276   :  { %v334_v24 = vmul.f32 %v1896_v22, %v332_v23 }
 0x278   :  { %335 = vst.msk [vmem:[#allocation3] sm:$0xff] %vm56_vm0, %v334_v24  ;;  %1618 = vmatmul.mubr.msk.f32.vlgmr.msra.gmra.mrb[2].mxu1 %vm228_vm2, %v334_v24 }
 0x279   :  { %338 = vst.msk [vmem:[#allocation3 + $0x38] sm:$0xff] %vm337_vm1, %v334_v24 }
 0x34b   :  { %v411_v25 = vpop.f32.mrb[2].mxu1 }
 0x34c   :  { %v413_v26 = vpop.f32.mrb[3].mxu1  ;;  %v1850_v31 = vadd.f32 %v411_v25, %v2251_v4 }
 0x34d   :  { %v1851_v28 = vadd.f32 %v413_v26, %v2246_v61 }
 0x34e   :  { %v1619_v32 = vmul.f32 -1.442695, %v1850_v31  ;;  %v168_v31 = vadd.f32 %v2221_v48, %v2246_v61 }
 0x34f   :  { %1897 = vtanh.f32 %v1851_v28  ;;  %v1620_v57 = vmul.f32 -1.442695, %v1851_v28 }
 0x350   :  { %1899 = vpow2.f32 %v1619_v32 }
 0x359   :  { %v1898_v29 = vpop.eup %1897 }
 0x35a   :  { %433 = vrot.lane.b32.xlu1 %v1898_v29, %s2016_s17  ;;  %v1900_v33 = vpop.eup %1899  ;;  %v166_v29 = vadd.f32 %v2219_v47, %v2251_v4 }
 0x35b   :  { %v424_v35 = vadd.f32 1.0, %v1900_v33 }
 0x35d   :  { %1901 = vrcp.f32 %v424_v35 }
 0x367   :  { %v1902_v36 = vpop.eup %1901 }
 0x368   :  { %v431_v41 = vmul.f32 %v1902_v36, %v328_v14 }
 0x3cc   :  { %v434_v38 = vpop.permute.xlu1 %433 }
 0x3cd   :  { %v436_v40 = vmul.f32 %v1902_v36, %v434_v38 }
 0x3cf   :  { %438 = vrot.lane.b32.xlu0 %v436_v40, %s2016_s17 }
 0x441   :  { %v439_v42 = vpop.permute.xlu0 %438 }
 0x442   :  { %v441_v43 = vadd.f32 %v439_v42, %v431_v41 }
 0x444   :  { %1903 = vtanh.f32 %v441_v43 }
 0x445   :  { %1905 = vpow2.f32 %v1620_v57 }
 0x44e   :  { %v1904_v44 = vpop.eup %1903 }
 0x44f   :  { %444 = vrot.lane.b32.xlu1 %v1904_v44, %s2016_s17  ;;  %v1906_v59 = vpop.eup %1905 }
 0x450   :  { %v425_v62 = vadd.f32 1.0, %v1906_v59 }
 0x452   :  { %1907 = vrcp.f32 %v425_v62 }
 0x45c   :  { %v1908_v63 = vpop.eup %1907 }
 0x4c1   :  { %v445_v0 = vpop.permute.xlu1 %444 }
 0x4c2   :  { %v447_v1 = vmul.f32 %v1908_v63, %v445_v0 }
 0x4c4   :  { %449 = vst.msk [vmem:[#allocation3 + $0x8] sm:$0xff] %vm56_vm0, %v447_v1  ;;  %1621 = vmatmul.mubr.msk.f32.vlgmr.msra.gmra.mrb[0].mxu0 %vm228_vm2, %v447_v1 }
 0x4c5   :  { %451 = vst.msk [vmem:[#allocation3 + $0x30] sm:$0xff] %vm337_vm1, %v447_v1  ;;  %1755 = vmatpush1.bf16.msra.mxu0 %v2098_v18  ;;  %635 = vmatprep.mubr.f32.mxu0 %v2015_v3 }
 0x4c6   :  { %1757 = vmatprep.subr.bf16.mxu0 %v2106_v21 }
 0x4c9   :  { %1759 = vmatpush1.bf16.msra.mxu0 %v2127_v27 }
 0x4ca   :  { %1761 = vmatprep.subr.bf16.mxu0 %v2136_v30 }
 0x4cd   :  { %1763 = vmatpush1.bf16.msra.mxu0 %v2151_v34 }
 0x4ce   :  { %1765 = vmatprep.subr.bf16.mxu0 %v2161_v37 }
 0x4d1   :  { %1767 = vmatpush1.bf16.msra.mxu0 %v2170_v39 }
 0x4d2   :  { %1769 = vmatprep.subr.bf16.mxu0 %v2093_v16 }
 0x597   :  { %v524_v6 = vpop.f32.mrb[0].mxu0 }
 0x598   :  { %v529_v7 = vadd.f32 %v524_v6, %v160_v2  ;;  %v526_v8 = vpop.f32.mrb[1].mxu0 }
 0x599   :  { %v530_v9 = vadd.f32 %v526_v8, %v162_v5  ;;  %v174_v8 = vadd.f32 %v2225_v50, %v2246_v61 }
 0x59a   :  { %v1622_v11 = vmul.f32 -1.442695, %v529_v7  ;;  %v172_v7 = vadd.f32 %v2223_v49, %v2251_v4 }
 0x59b   :  { %1909 = vtanh.f32 %v530_v9  ;;  %v1623_v22 = vmul.f32 -1.442695, %v530_v9 }
 0x59c   :  { %1911 = vpow2.f32 %v1622_v11 }
 0x5a5   :  { %v1910_v10 = vpop.eup %1909 }
 0x5a6   :  { %546 = vrot.lane.b32.xlu0 %v1910_v10, %s2016_s17  ;;  %v1912_v12 = vpop.eup %1911 }
 0x5a7   :  { %v537_v13 = vadd.f32 1.0, %v1912_v12 }
 0x5a9   :  { %1913 = vrcp.f32 %v537_v13 }
 0x5b3   :  { %v1914_v14 = vpop.eup %1913 }
 0x5b4   :  { %v544_v45 = vmul.f32 %v1914_v14, %v441_v43 }
 0x618   :  { %v547_v15 = vpop.permute.xlu0 %546 }
 0x619   :  { %v549_v17 = vmul.f32 %v1914_v14, %v547_v15 }
 0x61b   :  { %551 = vrot.lane.b32.xlu1 %v549_v17, %s2016_s17 }
 0x68d   :  { %v552_v46 = vpop.permute.xlu1 %551 }
 0x68e   :  { %v554_v19 = vadd.f32 %v552_v46, %v544_v45 }
 0x690   :  { %1915 = vtanh.f32 %v554_v19 }
 0x691   :  { %1917 = vpow2.f32 %v1623_v22 }
 0x69a   :  { %v1916_v20 = vpop.eup %1915 }
 0x69b   :  { %557 = vrot.lane.b32.xlu0 %v1916_v20, %s2016_s17  ;;  %v1918_v23 = vpop.eup %1917 }
 0x69c   :  { %v538_v24 = vadd.f32 1.0, %v1918_v23 }
 0x69e   :  { %1919 = vrcp.f32 %v538_v24 }
 0x6a8   :  { %v1920_v25 = vpop.eup %1919 }
 0x70d   :  { %v558_v26 = vpop.permute.xlu0 %557 }
 0x70e   :  { %v560_v28 = vmul.f32 %v1920_v25, %v558_v26 }
 0x710   :  { %562 = vst.msk [vmem:[#allocation3 + $0x10] sm:$0xff] %vm56_vm0, %v560_v28  ;;  %1624 = vmatmul.mubr.msk.f32.vlgmr.msra.gmra.mrb[2].mxu0 %vm228_vm2, %v560_v28 }
 0x711   :  { %564 = vst.msk [vmem:[#allocation3 + $0x28] sm:$0xff] %vm337_vm1, %v560_v28  ;;  %1771 = vmatpush1.bf16.msra.mxu0 %v2098_v18  ;;  %748 = vmatprep.mubr.f32.mxu0 %v2015_v3 }
 0x712   :  { %1773 = vmatprep.subr.bf16.mxu0 %v2106_v21 }
 0x715   :  { %1775 = vmatpush1.bf16.msra.mxu0 %v2127_v27 }
 0x716   :  { %1777 = vmatprep.subr.bf16.mxu0 %v2136_v30 }
 0x719   :  { %1779 = vmatpush1.bf16.msra.mxu0 %v2151_v34 }
 0x71a   :  { %1781 = vmatprep.subr.bf16.mxu0 %v2161_v37 }
 0x71d   :  { %1783 = vmatpush1.bf16.msra.mxu0 %v2170_v39 }
 0x71e   :  { %1785 = vmatprep.subr.bf16.mxu0 %v2093_v16 }
 0x7e3   :  { %v637_v32 = vpop.f32.mrb[2].mxu0 }
 0x7e4   :  { %v642_v33 = vadd.f32 %v637_v32, %v166_v29  ;;  %v639_v35 = vpop.f32.mrb[3].mxu0  ;;  %v180_v32 = vadd.f32 %v2229_v53, %v2246_v61 }
 0x7e5   :  { %v643_v36 = vadd.f32 %v639_v35, %v168_v31  ;;  %v178_v31 = vadd.f32 %v2227_v52, %v2251_v4 }
 0x7e6   :  { %v1625_v40 = vmul.f32 -1.442695, %v642_v33 }
 0x7e7   :  { %1921 = vtanh.f32 %v643_v36  ;;  %v1626_v63 = vmul.f32 -1.442695, %v643_v36 }
 0x7e8   :  { %1923 = vpow2.f32 %v1625_v40 }
 0x7f1   :  { %v1922_v38 = vpop.eup %1921 }
 0x7f2   :  { %659 = vrot.lane.b32.xlu1 %v1922_v38, %s2016_s17  ;;  %v1924_v41 = vpop.eup %1923 }
 0x7f3   :  { %v650_v42 = vadd.f32 1.0, %v1924_v41 }
 0x7f5   :  { %1925 = vrcp.f32 %v650_v42 }
 0x7ff   :  { %v1926_v43 = vpop.eup %1925 }
 0x800   :  { %v657_v47 = vmul.f32 %v1926_v43, %v554_v19 }
 0x864   :  { %v660_v44 = vpop.permute.xlu1 %659 }
 0x865   :  { %v662_v57 = vmul.f32 %v1926_v43, %v660_v44 }
 0x867   :  { %664 = vrot.lane.b32.xlu0 %v662_v57, %s2016_s17 }
 0x8d9   :  { %v665_v48 = vpop.permute.xlu0 %664 }
 0x8da   :  { %v667_v59 = vadd.f32 %v665_v48, %v657_v47 }
 0x8dc   :  { %1927 = vtanh.f32 %v667_v59 }
 0x8dd   :  { %1929 = vpow2.f32 %v1626_v63 }
 0x8e6   :  { %v1928_v62 = vpop.eup %1927 }
 0x8e7   :  { %670 = vrot.lane.b32.xlu1 %v1928_v62, %s2016_s17  ;;  %v1930_v0 = vpop.eup %1929 }
 0x8e8   :  { %v651_v1 = vadd.f32 1.0, %v1930_v0 }
 0x8ea   :  { %1931 = vrcp.f32 %v651_v1 }
 0x8f4   :  { %v1932_v2 = vpop.eup %1931 }
 0x959   :  { %v671_v5 = vpop.permute.xlu1 %670 }
 0x95a   :  { %v673_v6 = vmul.f32 %v1932_v2, %v671_v5  ;;  %v184_v5 = vadd.f32 %v2234_v55, %v2251_v4 }
 0x95c   :  { %675 = vst.msk [vmem:[#allocation3 + $0x18] sm:$0xff] %vm56_vm0, %v673_v6  ;;  %1627 = vmatmul.mubr.msk.f32.vlgmr.msra.gmra.mrb[4].mxu0 %vm228_vm2, %v673_v6 }
 0x95d   :  { %677 = vst.msk [vmem:[#allocation3 + $0x20] sm:$0xff] %vm337_vm1, %v673_v6  ;;  %1787 = vmatpush1.bf16.msra.mxu0 %v2098_v18  ;;  %859 = vmatprep.mubr.f32.mxu0 %v2015_v3 }
 0x95e   :  { %1789 = vmatprep.subr.bf16.mxu0 %v2106_v21 }
 0x961   :  { %1791 = vmatpush1.bf16.msra.mxu0 %v2127_v27 }
 0x962   :  { %1793 = vmatprep.subr.bf16.mxu0 %v2136_v30 }
 0x965   :  { %1795 = vmatpush1.bf16.msra.mxu0 %v2151_v34 }
 0x966   :  { %1797 = vmatprep.subr.bf16.mxu0 %v2161_v37 }
 0x969   :  { %1799 = vmatpush1.bf16.msra.mxu0 %v2170_v39 }
 0x96a   :  { %1801 = vmatprep.subr.bf16.mxu0 %v2093_v16 }
 0xa2f   :  { %v750_v9 = vpop.f32.mrb[4].mxu0 }
 0xa30   :  { %v755_v10 = vadd.f32 %v750_v9, %v172_v7  ;;  %v752_v11 = vpop.f32.mrb[5].mxu0 }
 0xa31   :  { %v756_v12 = vadd.f32 %v752_v11, %v174_v8 }
 0xa32   :  { %v1628_v14 = vmul.f32 -1.442695, %v755_v10 }
 0xa33   :  { %1933 = vtanh.f32 %v756_v12  ;;  %v1629_v23 = vmul.f32 -1.442695, %v756_v12 }
 0xa34   :  { %1935 = vpow2.f32 %v1628_v14 }
 0xa3d   :  { %v1934_v13 = vpop.eup %1933 }
 0xa3e   :  { %772 = vrot.lane.b32.xlu0 %v1934_v13, %s2016_s17  ;;  %v1936_v15 = vpop.eup %1935 }
 0xa3f   :  { %v763_v17 = vadd.f32 1.0, %v1936_v15 }
 0xa41   :  { %1937 = vrcp.f32 %v763_v17 }
 0xa4b   :  { %v1938_v45 = vpop.eup %1937 }
 0xa4c   :  { %v770_v49 = vmul.f32 %v1938_v45, %v667_v59 }
 0xab0   :  { %v773_v46 = vpop.permute.xlu0 %772 }
 0xab1   :  { %v775_v19 = vmul.f32 %v1938_v45, %v773_v46  ;;  %v190_v46 = vadd.f32 %v2239_v58, %v2251_v4  ;;  %v1131_v58 = vld [vmem:[%s2546_s4] sm:$0xff] }
 0xab3   :  { %777 = vrot.lane.b32.xlu1 %v775_v19, %s2016_s17  ;;  %v192_v19 = vadd.f32 %v2244_v60, %v2246_v61  ;;  %v1132_v60 = vld [vmem:[%s2546_s4 + $0x8] sm:$0xff] }
 0xab4   :  { %v1832_v4 = vpack.c.bf16 %v1132_v60, %v1131_v58 }
 0xab6   :  { %1833 = vmatprep.subr.bf16.mxu1 %v1832_v4 }
 0xab7   :  { %1835 = vmatpush3.bf16.msra.mxu1 %v1832_v4 }
 0xb25   :  { %v778_v50 = vpop.permute.xlu1 %777 }
 0xb26   :  { %v780_v20 = vadd.f32 %v778_v50, %v770_v49 }
 0xb28   :  { %1939 = vtanh.f32 %v780_v20 }
 0xb29   :  { %1941 = vpow2.f32 %v1629_v23 }
 0xb32   :  { %v1940_v22 = vpop.eup %1939 }
 0xb33   :  { %783 = vrot.lane.b32.xlu0 %v1940_v22, %s2016_s17  ;;  %v1942_v24 = vpop.eup %1941 }
 0xb34   :  { %v764_v25 = vadd.f32 1.0, %v1942_v24 }
 0xb36   :  { %1943 = vrcp.f32 %v764_v25 }
 0xb40   :  { %v1944_v26 = vpop.eup %1943 }
 0xba5   :  { %v784_v28 = vpop.permute.xlu0 %783 }
 0xba6   :  { %v786_v29 = vmul.f32 %v1944_v26, %v784_v28 }
 0xba8   :  { %787 = vst.msk [vmem:[#allocation3 + $0x20] sm:$0xff] %vm56_vm0, %v786_v29  ;;  %1630 = vmatmul.mubr.msk.f32.vlgmr.msra.gmra.mrb[6].mxu0 %vm228_vm2, %v786_v29 }
 0xba9   :  { %788 = vst.msk [vmem:[#allocation3 + $0x18] sm:$0xff] %vm337_vm1, %v786_v29  ;;  %1803 = vmatpush1.bf16.msra.mxu0 %v2098_v18  ;;  %970 = vmatprep.mubr.f32.mxu0 %v2015_v3 }
 0xbaa   :  { %1805 = vmatprep.subr.bf16.mxu0 %v2106_v21 }
 0xbad   :  { %1807 = vmatpush1.bf16.msra.mxu0 %v2127_v27 }
 0xbae   :  { %1809 = vmatprep.subr.bf16.mxu0 %v2136_v30 }
 0xbb1   :  { %1811 = vmatpush1.bf16.msra.mxu0 %v2151_v34 }
 0xbb2   :  { %1813 = vmatprep.subr.bf16.mxu0 %v2161_v37 }
 0xbb5   :  { %1815 = vmatpush1.bf16.msra.mxu0 %v2170_v39 }
 0xbb6   :  { %1817 = vmatprep.subr.bf16.mxu0 %v2093_v16 }
 0xc7b   :  { %v861_v33 = vpop.f32.mrb[6].mxu0 }
 0xc7c   :  { %v866_v35 = vadd.f32 %v861_v33, %v178_v31  ;;  %v863_v36 = vpop.f32.mrb[7].mxu0 }
 0xc7d   :  { %v867_v38 = vadd.f32 %v863_v36, %v180_v32  ;;  %v1134_v32 = vld [vmem:[%s2546_s4 + $0x18] sm:$0xff] }
 0xc7e   :  { %v1631_v41 = vmul.f32 -1.442695, %v866_v35 }
 0xc7f   :  { %1945 = vtanh.f32 %v867_v38  ;;  %v1632_v59 = vmul.f32 -1.442695, %v867_v38 }
 0xc80   :  { %1947 = vpow2.f32 %v1631_v41  ;;  %v1136_v41 = vld [vmem:[%s2546_s4 + $0x28] sm:$0xff] }
 0xc89   :  { %v1946_v40 = vpop.eup %1945 }
 0xc8a   :  { %883 = vrot.lane.b32.xlu1 %v1946_v40, %s2016_s17  ;;  %v1948_v42 = vpop.eup %1947  ;;  %v1135_v40 = vld [vmem:[%s2546_s4 + $0x20] sm:$0xff] }
 0xc8b   :  { %v874_v43 = vadd.f32 1.0, %v1948_v42  ;;  %v1840_v42 = vpack.c.bf16 %v1136_v41, %v1135_v40 }
 0xc8d   :  { %1949 = vrcp.f32 %v874_v43  ;;  %v1137_v43 = vld [vmem:[%s2546_s4 + $0x30] sm:$0xff] }
 0xc97   :  { %v1950_v16 = vpop.eup %1949 }
 0xc98   :  { %v881_v52 = vmul.f32 %v1950_v16, %v780_v20 }
 0xcfc   :  { %v884_v44 = vpop.permute.xlu1 %883 }
 0xcfd   :  { %v886_v57 = vmul.f32 %v1950_v16, %v884_v44  ;;  %v1138_v16 = vld [vmem:[%s2546_s4 + $0x38] sm:$0xff] }
 0xcfe   :  { %v1844_v44 = vpack.c.bf16 %v1138_v16, %v1137_v43 }
 0xcff   :  { %888 = vrot.lane.b32.xlu0 %v886_v57, %s2016_s17 }
 0xd71   :  { %v889_v53 = vpop.permute.xlu0 %888 }
 0xd72   :  { %v891_v47 = vadd.f32 %v889_v53, %v881_v52 }
 0xd74   :  { %1951 = vtanh.f32 %v891_v47 }
 0xd75   :  { %1953 = vpow2.f32 %v1632_v59 }
 0xd7e   :  { %v1952_v48 = vpop.eup %1951 }
 0xd7f   :  { %894 = vrot.lane.b32.xlu1 %v1952_v48, %s2016_s17  ;;  %v1954_v62 = vpop.eup %1953 }
 0xd80   :  { %v875_v63 = vadd.f32 1.0, %v1954_v62 }
 0xd82   :  { %1955 = vrcp.f32 %v875_v63 }
 0xd8c   :  { %v1956_v0 = vpop.eup %1955 }
 0xdf1   :  { %v895_v1 = vpop.permute.xlu1 %894 }
 0xdf2   :  { %v897_v2 = vmul.f32 %v1956_v0, %v895_v1 }
 0xdf4   :  { %898 = vst.msk [vmem:[#allocation3 + $0x28] sm:$0xff] %vm56_vm0, %v897_v2  ;;  %1633 = vmatmul.mubr.msk.f32.vlgmr.msra.gmra.mrb[8].mxu0 %vm228_vm2, %v897_v2 }
 0xdf5   :  { %899 = vst.msk [vmem:[#allocation3 + $0x10] sm:$0xff] %vm337_vm1, %v897_v2  ;;  %1819 = vmatpush1.bf16.msra.mxu0 %v2098_v18  ;;  %1081 = vmatprep.mubr.f32.mxu0 %v2015_v3  ;;  %v186_v18 = vadd.f32 %v2236_v56, %v2246_v61  ;;  %v1133_v61 = vld [vmem:[%s2546_s4 + $0x10] sm:$0xff]  ;;  %v2406_v2 = vld [vmem:[#allocation3 + $0x18] sm:$0xff] }
 0xdf6   :  { %1821 = vmatprep.subr.bf16.mxu0 %v2106_v21  ;;  %v1836_v33 = vpack.c.bf16 %v1134_v32, %v1133_v61 }
 0xdf8   :  { %1837 = vmatprep.subr.bf16.mxu1 %v1836_v33 }
 0xdf9   :  { %1823 = vmatpush1.bf16.msra.mxu0 %v2127_v27  ;;  %1839 = vmatpush3.bf16.msra.mxu1 %v1836_v33 }
 0xdfa   :  { %1825 = vmatprep.subr.bf16.mxu0 %v2136_v30  ;;  %1841 = vmatprep.subr.bf16.mxu1 %v1840_v42 }
 0xdfc   :  { %v2402_v1 = vld [vmem:[#allocation3 + $0x10] sm:$0xff] }
 0xdfd   :  { %1827 = vmatpush1.bf16.msra.mxu0 %v2151_v34  ;;  %1843 = vmatpush3.bf16.msra.mxu1 %v1840_v42 }
 0xdfe   :  { %1829 = vmatprep.subr.bf16.mxu0 %v2161_v37  ;;  %1845 = vmatprep.subr.bf16.mxu1 %v1844_v44 }
 0xe01   :  { %1831 = vmatpush1.bf16.msra.mxu0 %v2170_v39  ;;  %1847 = vmatpush3.bf16.msra.mxu1 %v1844_v44 }
 0xec7   :  { %v972_v6 = vpop.f32.mrb[8].mxu0 }
 0xec8   :  { %v977_v3 = vadd.f32 %v972_v6, %v184_v5  ;;  %v974_v7 = vpop.f32.mrb[9].mxu0  ;;  %v2410_v5 = vld [vmem:[#allocation3 + $0x20] sm:$0xff] }
 0xec9   :  { %v978_v21 = vadd.f32 %v974_v7, %v186_v18  ;;  %v2414_v18 = vld [vmem:[#allocation3 + $0x28] sm:$0xff] }
 0xeca   :  { %v1634_v30 = vmul.f32 -1.442695, %v977_v3 }
 0xecb   :  { %1957 = vtanh.f32 %v978_v21  ;;  %v1635_v12 = vmul.f32 -1.442695, %v978_v21 }
 0xecc   :  { %1959 = vpow2.f32 %v1634_v30 }
 0xed5   :  { %v1958_v27 = vpop.eup %1957 }
 0xed6   :  { %994 = vrot.lane.b32.xlu0 %v1958_v27, %s2016_s17  ;;  %v1960_v34 = vpop.eup %1959  ;;  %v1647_v27 = vld [vmem:[%s2547_s5] ss:$0 sm:$0xff] }
 0xed7   :  { %v985_v37 = vadd.f32 1.0, %v1960_v34 }
 0xed9   :  { %1961 = vrcp.f32 %v985_v37 }
 0xee3   :  { %v1962_v39 = vpop.eup %1961 }
 0xee4   :  { %v992_v55 = vmul.f32 %v1962_v39, %v891_v47 }
 0xf48   :  { %v995_v8 = vpop.permute.xlu0 %994 }
 0xf49   :  { %v997_v9 = vmul.f32 %v1962_v39, %v995_v8 }
 0xf4b   :  { %999 = vrot.lane.b32.xlu1 %v997_v9, %s2016_s17 }
 0xfbd   :  { %v1000_v56 = vpop.permute.xlu1 %999 }
 0xfbe   :  { %v1002_v10 = vadd.f32 %v1000_v56, %v992_v55 }
 0xfc0   :  { %1963 = vtanh.f32 %v1002_v10 }
 0xfc1   :  { %1965 = vpow2.f32 %v1635_v12 }
 0xfca   :  { %v1964_v11 = vpop.eup %1963 }
 0xfcb   :  { %1005 = vrot.lane.b32.xlu0 %v1964_v11, %s2016_s17  ;;  %v1966_v13 = vpop.eup %1965 }
 0xfcc   :  { %v986_v14 = vadd.f32 1.0, %v1966_v13 }
 0xfce   :  { %1967 = vrcp.f32 %v986_v14 }
 0xfd8   :  { %v1968_v15 = vpop.eup %1967 }
0x103d   :  { %v1006_v17 = vpop.permute.xlu0 %1005 }
0x103e   :  { %v1008_v45 = vmul.f32 %v1968_v15, %v1006_v17 }
0x1040   :  { %1009 = vst.msk [vmem:[#allocation3 + $0x30] sm:$0xff] %vm56_vm0, %v1008_v45  ;;  %1636 = vmatmul.mubr.msk.f32.vlgmr.msra.gmra.mrb[10].mxu0 %vm228_vm2, %v1008_v45 }
0x1041   :  { %1010 = vst.msk [vmem:[#allocation3 + $0x8] sm:$0xff] %vm337_vm1, %v1008_v45 }
0x1047   :  { %v2418_v6 = vld [vmem:[#allocation3 + $0x30] sm:$0xff] }
0x1048   :  { %v2398_v0 = vld [vmem:[#allocation3 + $0x8] sm:$0xff] }
0x1113   :  { %v1083_v49 = vpop.f32.mrb[10].mxu0 }
0x1114   :  { %v1088_v50 = vadd.f32 %v1083_v49, %v190_v46  ;;  %v1085_v20 = vpop.f32.mrb[11].mxu0 }
0x1115   :  { %v1089_v22 = vadd.f32 %v1085_v20, %v192_v19 }
0x1116   :  { %v1637_v24 = vmul.f32 -1.442695, %v1088_v50 }
0x1117   :  { %1969 = vtanh.f32 %v1089_v22  ;;  %v1638_v52 = vmul.f32 -1.442695, %v1089_v22 }
0x1118   :  { %1971 = vpow2.f32 %v1637_v24 }
0x1121   :  { %v1970_v23 = vpop.eup %1969 }
0x1122   :  { %1105 = vrot.lane.b32.xlu1 %v1970_v23, %s2016_s17  ;;  %v1972_v25 = vpop.eup %1971 }
0x1123   :  { %v1096_v26 = vadd.f32 1.0, %v1972_v25 }
0x1125   :  { %1973 = vrcp.f32 %v1096_v26 }
0x112f   :  { %v1974_v28 = vpop.eup %1973 }
0x1130   :  { %v1103_v35 = vmul.f32 %v1974_v28, %v1002_v10 }
0x1194   :  { %v1106_v29 = vpop.permute.xlu1 %1105 }
0x1195   :  { %v1108_v31 = vmul.f32 %v1974_v28, %v1106_v29 }
0x1197   :  { %1110 = vrot.lane.b32.xlu0 %v1108_v31, %s2016_s17 }
0x1209   :  { %v1111_v36 = vpop.permute.xlu0 %1110 }
0x120a   :  { %v1113_v38 = vadd.f32 %v1111_v36, %v1103_v35 }
0x120c   :  { %1975 = vtanh.f32 %v1113_v38 }
0x120d   :  { %1977 = vpow2.f32 %v1638_v52 }
0x1216   :  { %v1976_v57 = vpop.eup %1975 }
0x1217   :  { %1116 = vrot.lane.b32.xlu1 %v1976_v57, %s2016_s17  ;;  %v1978_v53 = vpop.eup %1977 }
0x1218   :  { %v1097_v47 = vadd.f32 1.0, %v1978_v53 }
0x121a   :  { %1979 = vrcp.f32 %v1097_v47 }
0x1224   :  { %v1980_v48 = vpop.eup %1979 }
0x1289   :  { %v1117_v59 = vpop.permute.xlu1 %1116 }
0x128a   :  { %v1119_v62 = vmul.f32 %v1980_v48, %v1117_v59 }
0x128c   :  { %1120 = vst.msk [vmem:[#allocation3 + $0x38] sm:$0xff] %vm56_vm0, %v1119_v62 }
0x128d   :  { %1121 = vst.msk [vmem:[#allocation3] sm:$0xff] %vm337_vm1, %v1119_v62 }
0x1293   :  { %v2422_v3 = vld [vmem:[#allocation3 + $0x38] sm:$0xff] }
0x1294   :  { %v2394_v63 = vld [vmem:[#allocation3] sm:$0xff] }
0x1295   :  { %1684 = vmatprep.mubr.msk.f32.mxu1 %vm228_vm2, %v2394_v63 }
0x1296   :  { %1685 = vmatmul.mubr.msk.f32.vlgmr.msra.gmra.mrb[16].mxu1 %vm228_vm2, %v2398_v0 }
0x1297   :  { %1687 = vmatprep.mubr.msk.f32.mxu1 %vm228_vm2, %v2402_v1 }
0x129a   :  { %1688 = vmatmul.mubr.msk.f32.gmra.mrb[18].mxu1 %vm228_vm2, %v2406_v2 }
0x129b   :  { %1690 = vmatprep.mubr.msk.f32.mxu1 %vm228_vm2, %v2410_v5 }
0x129e   :  { %1691 = vmatmul.mubr.msk.f32.gmra.mrb[20].mxu1 %vm228_vm2, %v2414_v18 }
0x129f   :  { %1693 = vmatprep.mubr.msk.f32.mxu1 %vm228_vm2, %v2418_v6 }
0x12a2   :  { %1694 = vmatmul.mubr.msk.f32.gmra.mrb[22].mxu1 %vm228_vm2, %v2422_v3 }
0x1369   :  { %v1686_v7 = vpop.f32.mrb[16].mxu1 }
0x136a   :  { %v1229_v21 = vpop.f32.mrb[17].mxu1  ;;  %v1273_v37 = vadd.f32 %v1686_v7, %v1647_v27 }
0x136b   :  { %v1272_v39 = vadd.f32 %v1647_v27, %v1229_v21 }
0x136c   :  { %v1281_v10 = vsel %vm228_vm2, %v1273_v37, -inf }
0x136d   :  { %v1689_v30 = vpop.f32.mrb[18].mxu1  ;;  %v1280_v13 = vsel %vm228_vm2, %v1272_v39, -inf }
0x136e   :  { %v1239_v34 = vpop.f32.mrb[19].mxu1  ;;  %v1275_v11 = vadd.f32 %v1689_v30, %v1647_v27 }
0x136f   :  { %v1274_v14 = vadd.f32 %v1647_v27, %v1239_v34 }
0x1370   :  { %v1283_v20 = vsel %vm228_vm2, %v1275_v11, -inf }
0x1371   :  { %v1692_v8 = vpop.f32.mrb[20].mxu1  ;;  %v1282_v24 = vsel %vm228_vm2, %v1274_v14, -inf }
0x1372   :  { %v1277_v9 = vadd.f32 %v1692_v8, %v1647_v27  ;;  %v1249_v55 = vpop.f32.mrb[21].mxu1 }
0x1373   :  { %v1276_v56 = vadd.f32 %v1647_v27, %v1249_v55 }
0x1374   :  { %v1286_v12 = vsel %vm228_vm2, %v1277_v9, -inf }
0x1375   :  { %v1287_v15 = vmax.f32 %v1281_v10, %v1286_v12  ;;  %v1284_v17 = vsel %vm228_vm2, %v1276_v56, -inf  ;;  %v1695_v45 = vpop.f32.mrb[22].mxu1 }
0x1376   :  { %v1285_v46 = vmax.f32 %v1280_v13, %v1284_v17  ;;  %v1279_v19 = vadd.f32 %v1695_v45, %v1647_v27  ;;  %v1259_v49 = vpop.f32.mrb[23].mxu1 }
0x1377   :  { %v1278_v50 = vadd.f32 %v1647_v27, %v1259_v49 }
0x1378   :  { %v1292_v22 = vmax.f32 %v1285_v46, %v1287_v15  ;;  %v1290_v23 = vsel %vm228_vm2, %v1279_v19, -inf }
0x1379   :  { %v1291_v25 = vmax.f32 %v1283_v20, %v1290_v23  ;;  %v1288_v26 = vsel %vm228_vm2, %v1278_v50, -inf }
0x137a   :  { %v1289_v28 = vmax.f32 %v1282_v24, %v1288_v26 }
0x137c   :  { %v1293_v29 = vmax.f32 %v1289_v28, %v1291_v25 }
0x137e   :  { %v1294_v31 = vmax.f32 %v1292_v22, %v1293_v29 }
0x1380   :  { %v1295_v58 = vsub.f32 %v1272_v39, %v1294_v31  ;;  %v1296_v60 = vsub.f32 %v1273_v37, %v1294_v31  ;;  %v1297_v61 = vsub.f32 %v1274_v14, %v1294_v31  ;;  %v1298_v4 = vsub.f32 %v1275_v11, %v1294_v31 }
0x1381   :  { %v1299_v32 = vsub.f32 %v1276_v56, %v1294_v31  ;;  %v1300_v33 = vsub.f32 %v1277_v9, %v1294_v31  ;;  %v1301_v35 = vsub.f32 %v1278_v50, %v1294_v31  ;;  %v1302_v36 = vsub.f32 %v1279_v19, %v1294_v31 }
0x1382   :  { %v1303_v38 = vmul.f32 1.442695, %v1295_v58  ;;  %v1305_v40 = vmul.f32 1.442695, %v1296_v60  ;;  %v1307_v41 = vmul.f32 1.442695, %v1297_v61 }
0x1383   :  { %v1309_v42 = vmul.f32 1.442695, %v1298_v4  ;;  %v1311_v43 = vmul.f32 1.442695, %v1299_v32  ;;  %v1313_v16 = vmul.f32 1.442695, %v1300_v33 }
0x1384   :  { %1981 = vpow2.f32 %v1303_v38  ;;  %v1315_v44 = vmul.f32 1.442695, %v1301_v35  ;;  %v1317_v57 = vmul.f32 1.442695, %v1302_v36 }
0x1385   :  { %1983 = vpow2.f32 %v1305_v40 }
0x1386   :  { %1985 = vpow2.f32 %v1307_v41 }
0x1387   :  { %1987 = vpow2.f32 %v1309_v42 }
0x1388   :  { %1989 = vpow2.f32 %v1311_v43 }
0x1389   :  { %1991 = vpow2.f32 %v1313_v16 }
0x138a   :  { %1993 = vpow2.f32 %v1315_v44 }
0x138b   :  { %1995 = vpow2.f32 %v1317_v57 }
0x138e   :  { %v1982_v52 = vpop.eup %1981 }
0x138f   :  { %v1984_v53 = vpop.eup %1983  ;;  %v1319_v47 = vsel %vm228_vm2, %v1982_v52, 0.0 }
0x1390   :  { %v1986_v48 = vpop.eup %1985  ;;  %v1320_v59 = vsel %vm228_vm2, %v1984_v53, 0.0 }
0x1391   :  { %v1988_v62 = vpop.eup %1987  ;;  %v1321_v7 = vadd.f32 %v1320_v59, %v1319_v47  ;;  %v1322_v21 = vsel %vm228_vm2, %v1986_v48, 0.0 }
0x1392   :  { %v1990_v27 = vpop.eup %1989  ;;  %v1324_v34 = vsel %vm228_vm2, %v1988_v62, 0.0 }
0x1393   :  { %v1323_v30 = vadd.f32 %v1322_v21, %v1321_v7  ;;  %v1992_v37 = vpop.eup %1991  ;;  %v1326_v8 = vsel %vm228_vm2, %v1990_v27, 0.0 }
0x1394   :  { %v1994_v9 = vpop.eup %1993  ;;  %v1328_v56 = vsel %vm228_vm2, %v1992_v37, 0.0 }
0x1395   :  { %v1325_v39 = vadd.f32 %v1324_v34, %v1323_v30  ;;  %v1996_v10 = vpop.eup %1995  ;;  %v1330_v12 = vsel %vm228_vm2, %v1994_v9, 0.0 }
0x1396   :  { %v1332_v14 = vsel %vm228_vm2, %v1996_v10, 0.0 }
0x1397   :  { %v1327_v55 = vadd.f32 %v1326_v8, %v1325_v39 }
0x1399   :  { %v1329_v11 = vadd.f32 %v1328_v56, %v1327_v55 }
0x139b   :  { %v1331_v13 = vadd.f32 %v1330_v12, %v1329_v11 }
0x139d   :  { %v1333_v15 = vadd.f32 %v1332_v14, %v1331_v13 }
0x139f   :  { %1997 = vrcp.f32 %v1333_v15 }
0x13a9   :  { %v1998_v17 = vpop.eup %1997 }
0x13aa   :  { %v1336_v45 = vmul.f32 %v1998_v17, %v1984_v53  ;;  %v1335_v46 = vmul.f32 %v1998_v17, %v1982_v52  ;;  %v1339_v19 = vmul.f32 %v1998_v17, %v1990_v27  ;;  %v1337_v49 = vmul.f32 %v1998_v17, %v1986_v48 }
0x13ab   :  { %v1341_v50 = vmul.f32 %v1998_v17, %v1994_v9  ;;  %v1338_v20 = vmul.f32 %v1998_v17, %v1988_v62  ;;  %v1340_v22 = vmul.f32 %v1998_v17, %v1992_v37  ;;  %v1342_v23 = vmul.f32 %v1998_v17, %v1996_v10 }
0x13ac   :  { %v1346_v24 = vmul.f32 %v1336_v45, %v2398_v0  ;;  %v1345_v25 = vmul.f32 %v1335_v46, %v2394_v63  ;;  %v1349_v26 = vmul.f32 %v1339_v19, %v2410_v5  ;;  %v1347_v28 = vmul.f32 %v1337_v49, %v2402_v1 }
0x13ad   :  { %v1351_v58 = vmul.f32 %v1341_v50, %v2418_v6  ;;  %v1348_v60 = vmul.f32 %v1338_v20, %v2406_v2  ;;  %v1350_v35 = vmul.f32 %v1340_v22, %v2414_v18  ;;  %v1352_v41 = vmul.f32 %v1342_v23, %v2422_v3 }
0x13ae   :  { %v1354_v29 = vadd.f32 %v1346_v24, %v2398_v0  ;;  %v1353_v31 = vadd.f32 %v1345_v25, %v2394_v63  ;;  %v1357_v32 = vadd.f32 %v1349_v26, %v2410_v5  ;;  %v1355_v33 = vadd.f32 %v1347_v28, %v2402_v1 }
0x13af   :  { %v1359_v36 = vadd.f32 %v1351_v58, %v2418_v6  ;;  %v1356_v38 = vadd.f32 %v1348_v60, %v2406_v2  ;;  %v1358_v1 = vadd.f32 %v1350_v35, %v2414_v18  ;;  %v1360_v43 = vadd.f32 %v1352_v41, %v2422_v3 }
0x13b0   :  { %v1364_v61 = vsel %vm228_vm2, %v1354_v29, 0.0  ;;  %v1361_v4 = vsel %vm228_vm2, %v1353_v31, 0.0  ;;  %v1373_v0 = vsel %vm228_vm2, %v1357_v32, 0.0  ;;  %v1367_v63 = vsel %vm228_vm2, %v1355_v33, 0.0 }
0x13b1   :  { %1365 = vadd.xlane.f32.xlu1 %v1364_v61  ;;  %1362 = vadd.xlane.f32.xlu0 %v1361_v4  ;;  %v1379_v40 = vsel %vm228_vm2, %v1359_v36, 0.0  ;;  %v1370_v5 = vsel %vm228_vm2, %v1356_v38, 0.0  ;;  %v1376_v42 = vsel %vm228_vm2, %v1358_v1, 0.0  ;;  %v1382_v6 = vsel %vm228_vm2, %v1360_v43, 0.0 }
0x13b2   :  { %v2017_v26 = vmov 0   ;;  %v12_v28 = vstv %s2548_s6 }
0x13b3   :  { %1883 = vset.pattern.permute.xlu1 %v2017_v26  ;;  %1884 = vset.pattern.permute.xlu0 %v2017_v26  ;;  %13 = vst [vmem:[#allocation4] sm:$0x1] %v12_v28 }
0x13b5   :  { %1374 = vadd.xlane.f32.xlu1 %v1373_v0  ;;  %1368 = vadd.xlane.f32.xlu0 %v1367_v63 }
0x13b9   :  { %1380 = vadd.xlane.f32.xlu1 %v1379_v40  ;;  %1371 = vadd.xlane.f32.xlu0 %v1370_v5 }
0x13bd   :  { %1377 = vadd.xlane.f32.xlu0 %v1376_v42 }
0x13c1   :  { %1383 = vadd.xlane.f32.xlu0 %v1382_v6 }
0x143e   :  { %v1366_v2 = vpop.xlane.xlu1 %1365  ;;  %v1363_v16 = vpop.xlane.xlu0 %1362 }
0x143f   :  { %v1387_v44 = vmul.f32 0.015625, %v1366_v2  ;;  %v1386_v57 = vmul.f32 0.015625, %v1363_v16 }
0x1441   :  { %v2469_v52 = vsub.f32 %v1354_v29, %v1387_v44  ;;  %v2471_v53 = vsub.f32 %v1353_v31, %v1386_v57  ;;  %v1648_v44 = vld [vmem:[%s2547_s5 + $0x1] ss:$0 sm:$0xff] }
0x1442   :  { %v1375_v18 = vpop.xlane.xlu1 %1374  ;;  %v1369_v47 = vpop.xlane.xlu0 %1368 }
0x1443   :  { %v1390_v48 = vmul.f32 0.015625, %v1375_v18  ;;  %v1388_v59 = vmul.f32 0.015625, %v1369_v47  ;;  %v1403_v62 = vmul.f32 %v2469_v52, %v2469_v52  ;;  %v1402_v3 = vmul.f32 %v2471_v53, %v2471_v53 }
0x1445   :  { %v2477_v7 = vsub.f32 %v1357_v32, %v1390_v48  ;;  %v2479_v21 = vsub.f32 %v1355_v33, %v1388_v59  ;;  %v1413_v27 = vsel %vm228_vm2, %v1403_v62, 0.0  ;;  %v1410_v30 = vsel %vm228_vm2, %v1402_v3, 0.0  ;;  %v1649_v59 = vld [vmem:[%s2547_s5 + $0x2] ss:$0 sm:$0xff] }
0x1446   :  { %v1381_v34 = vpop.xlane.xlu1 %1380  ;;  %1414 = vadd.xlane.f32.xlu0 %v1413_v27  ;;  %1411 = vadd.xlane.f32.xlu1 %v1410_v30  ;;  %v1372_v37 = vpop.xlane.xlu0 %1371 }
0x1447   :  { %v1392_v39 = vmul.f32 0.015625, %v1381_v34  ;;  %v1389_v8 = vmul.f32 0.015625, %v1372_v37  ;;  %v1404_v9 = vmul.f32 %v2479_v21, %v2479_v21  ;;  %v1406_v11 = vmul.f32 %v2477_v7, %v2477_v7  ;;  %v1650_v34 = vld [vmem:[%s2547_s5 + $0x3] ss:$0 sm:$0xff] }
0x1449   :  { %v2485_v55 = vsub.f32 %v1359_v36, %v1392_v39  ;;  %v2487_v56 = vsub.f32 %v1356_v38, %v1389_v8  ;;  %v1416_v10 = vsel %vm228_vm2, %v1404_v9, 0.0  ;;  %v1422_v17 = vsel %vm228_vm2, %v1406_v11, 0.0 }
0x144a   :  { %1417 = vadd.xlane.f32.xlu1 %v1416_v10  ;;  %v1378_v12 = vpop.xlane.xlu0 %1377 }
0x144b   :  { %v1391_v13 = vmul.f32 0.015625, %v1378_v12  ;;  %v1405_v14 = vmul.f32 %v2487_v56, %v2487_v56  ;;  %v1408_v46 = vmul.f32 %v2485_v55, %v2485_v55 }
0x144d   :  { %v2494_v15 = vsub.f32 %v1358_v1, %v1391_v13  ;;  %v1419_v45 = vsel %vm228_vm2, %v1405_v14, 0.0  ;;  %v1428_v22 = vsel %vm228_vm2, %v1408_v46, 0.0 }
0x144e   :  { %1423 = vadd.xlane.f32.xlu1 %v1422_v17  ;;  %1420 = vadd.xlane.f32.xlu0 %v1419_v45  ;;  %v1384_v19 = vpop.xlane.xlu0 %1383 }
0x144f   :  { %v1393_v49 = vmul.f32 0.015625, %v1384_v19  ;;  %v1407_v50 = vmul.f32 %v2494_v15, %v2494_v15 }
0x1451   :  { %v2502_v20 = vsub.f32 %v1360_v43, %v1393_v49  ;;  %v1425_v23 = vsel %vm228_vm2, %v1407_v50, 0.0 }
0x1452   :  { %1429 = vadd.xlane.f32.xlu1 %v1428_v22  ;;  %1426 = vadd.xlane.f32.xlu0 %v1425_v23 }
0x1453   :  { %v1409_v24 = vmul.f32 %v2502_v20, %v2502_v20 }
0x1455   :  { %v1431_v25 = vsel %vm228_vm2, %v1409_v24, 0.0 }
0x1456   :  { %1432 = vadd.xlane.f32.xlu0 %v1431_v25 }
0x14d3   :  { %v1412_v29 = vpop.xlane.xlu1 %1411  ;;  %v1415_v31 = vpop.xlane.xlu0 %1414 }
0x14d4   :  { %v1434_v58 = vmul.f32 0.015625, %v1412_v29  ;;  %v1435_v60 = vmul.f32 0.015625, %v1415_v31 }
0x14d6   :  { %v1442_v61 = vadd.f32 1e-05, %v1434_v58  ;;  %v1443_v4 = vadd.f32 1e-05, %v1435_v60 }
0x14d7   :  { %v1418_v32 = vpop.xlane.xlu1 %1417 }
0x14d8   :  { %1999 = vrsqrt.f32 %v1442_v61  ;;  %v1436_v33 = vmul.f32 0.015625, %v1418_v32 }
0x14d9   :  { %2001 = vrsqrt.f32 %v1443_v4 }
0x14da   :  { %v1444_v35 = vadd.f32 1e-05, %v1436_v33 }
0x14db   :  { %v1424_v0 = vpop.xlane.xlu1 %1423  ;;  %v1421_v63 = vpop.xlane.xlu0 %1420 }
0x14dc   :  { %2003 = vrsqrt.f32 %v1444_v35  ;;  %v1438_v36 = vmul.f32 0.015625, %v1424_v0  ;;  %v1437_v38 = vmul.f32 0.015625, %v1421_v63 }
0x14de   :  { %v1446_v40 = vadd.f32 1e-05, %v1438_v36  ;;  %v1445_v5 = vadd.f32 1e-05, %v1437_v38 }
0x14df   :  { %v1430_v1 = vpop.xlane.xlu1 %1429  ;;  %v1427_v41 = vpop.xlane.xlu0 %1426 }
0x14e0   :  { %2005 = vrsqrt.f32 %v1446_v40  ;;  %v1440_v42 = vmul.f32 0.015625, %v1430_v1  ;;  %v1439_v43 = vmul.f32 0.015625, %v1427_v41 }
0x14e1   :  { %2007 = vrsqrt.f32 %v1445_v5 }
0x14e2   :  { %v2000_v6 = vpop.eup %1999  ;;  %v1448_v2 = vadd.f32 1e-05, %v1440_v42  ;;  %v1447_v16 = vadd.f32 1e-05, %v1439_v43 }
0x14e3   :  { %v2002_v57 = vpop.eup %2001  ;;  %v1433_v18 = vpop.xlane.xlu0 %1432  ;;  %v1458_v47 = vmul.f32 %v2000_v6, %v2471_v53  ;;  %v1554_v6 = vand.u32 127, %v46_v51 }
0x14e4   :  { %2009 = vrsqrt.f32 %v1448_v2  ;;  %v1441_v48 = vmul.f32 0.015625, %v1433_v18  ;;  %v1459_v62 = vmul.f32 %v2002_v57, %v2469_v52 }
0x14e5   :  { %2011 = vrsqrt.f32 %v1447_v16  ;;  %v1470_v3 = vmul.f32 %v1648_v44, %v1458_v47 }
0x14e6   :  { %v2004_v27 = vpop.eup %2003  ;;  %v1449_v30 = vadd.f32 1e-05, %v1441_v48  ;;  %v1471_v37 = vmul.f32 %v1648_v44, %v1459_v62 }
0x14e7   :  { %v1482_v39 = vadd.f32 %v1649_v59, %v1470_v3  ;;  %v1460_v53 = vmul.f32 %v2004_v27, %v2479_v21 }
0x14e8   :  { %2013 = vrsqrt.f32 %v1449_v30  ;;  %v1483_v8 = vadd.f32 %v1649_v59, %v1471_v37 }
0x14e9   :  { %v1495_v9 = vmul.f32 %v1650_v34, %v1482_v39  ;;  %v1472_v10 = vmul.f32 %v1648_v44, %v1460_v53 }
0x14ea   :  { %v2006_v11 = vpop.eup %2005  ;;  %v1496_v12 = vmul.f32 %v1650_v34, %v1483_v8 }
0x14eb   :  { %v2008_v13 = vpop.eup %2007  ;;  %v1503_v52 = vsel %vm228_vm2, %v1495_v9, 0.0  ;;  %v1484_v14 = vadd.f32 %v1649_v59, %v1472_v10  ;;  %v1462_v17 = vmul.f32 %v2006_v11, %v2477_v7 }
0x14ec   :  { %1504 = vadd.xlane.f32.xlu1 %v1503_v52  ;;  %v1506_v45 = vsel %vm228_vm2, %v1496_v12, 0.0  ;;  %v1461_v46 = vmul.f32 %v2008_v13, %v2487_v56 }
0x14ed   :  { %1507 = vadd.xlane.f32.xlu0 %v1506_v45  ;;  %v1497_v19 = vmul.f32 %v1650_v34, %v1484_v14  ;;  %v1474_v21 = vmul.f32 %v1648_v44, %v1462_v17 }
0x14ee   :  { %v2010_v49 = vpop.eup %2009  ;;  %v1473_v50 = vmul.f32 %v1648_v44, %v1461_v46 }
0x14ef   :  { %v2012_v22 = vpop.eup %2011  ;;  %v1509_v23 = vsel %vm228_vm2, %v1497_v19, 0.0  ;;  %v1486_v24 = vadd.f32 %v1649_v59, %v1474_v21  ;;  %v1464_v25 = vmul.f32 %v2010_v49, %v2485_v55 }
0x14f0   :  { %1510 = vadd.xlane.f32.xlu1 %v1509_v23  ;;  %v1485_v26 = vadd.f32 %v1649_v59, %v1473_v50  ;;  %v1463_v7 = vmul.f32 %v2012_v22, %v2494_v15 }
0x14f1   :  { %v1499_v28 = vmul.f32 %v1650_v34, %v1486_v24  ;;  %v1476_v29 = vmul.f32 %v1648_v44, %v1464_v25 }
0x14f2   :  { %v2014_v31 = vpop.eup %2013  ;;  %v1498_v58 = vmul.f32 %v1650_v34, %v1485_v26  ;;  %v1475_v56 = vmul.f32 %v1648_v44, %v1463_v7 }
0x14f3   :  { %v1515_v60 = vsel %vm228_vm2, %v1499_v28, 0.0  ;;  %v1488_v61 = vadd.f32 %v1649_v59, %v1476_v29  ;;  %v1465_v4 = vmul.f32 %v2014_v31, %v2502_v20  ;;  %v1651_v20 = vld [vmem:[#allocation4] ss:$0 sm:$0xff] }
0x14f4   :  { %1516 = vadd.xlane.f32.xlu1 %v1515_v60  ;;  %v1512_v32 = vsel %vm228_vm2, %v1498_v58, 0.0  ;;  %v1487_v33 = vadd.f32 %v1649_v59, %v1475_v56 }
0x14f5   :  { %1513 = vadd.xlane.f32.xlu0 %v1512_v32  ;;  %v1501_v55 = vmul.f32 %v1650_v34, %v1488_v61  ;;  %v1477_v35 = vmul.f32 %v1648_v44, %v1465_v4  ;;  %v1557_v44 = vsub.s32 %v1554_v6, %v2232_v54 }
0x14f6   :  { %v1500_v0 = vmul.f32 %v1650_v34, %v1487_v33 }
0x14f7   :  { %v1521_v15 = vsel %vm228_vm2, %v1501_v55, 0.0  ;;  %v1489_v63 = vadd.f32 %v1649_v59, %v1477_v35 }
0x14f8   :  { %1522 = vadd.xlane.f32.xlu1 %v1521_v15  ;;  %v1518_v36 = vsel %vm228_vm2, %v1500_v0, 0.0 }
0x14f9   :  { %1519 = vadd.xlane.f32.xlu0 %v1518_v36  ;;  %v1502_v38 = vmul.f32 %v1650_v34, %v1489_v63 }
0x14fb   :  { %v1524_v40 = vsel %vm228_vm2, %v1502_v38, 0.0 }
0x14fd   :  { %1525 = vadd.xlane.f32.xlu0 %v1524_v40 }
0x1509   :  { %1534 = vperm.xlu1 %1883, %v1651_v20  }
0x1579   :  { %v1505_v5 = vpop.xlane.xlu1 %1504 }
0x157a   :  { %v1508_v41 = vpop.xlane.xlu0 %1507 }
0x157d   :  { %v1511_v1 = vpop.xlane.xlu1 %1510 }
0x1581   :  { %v1517_v42 = vpop.xlane.xlu1 %1516 }
0x1582   :  { %v1514_v43 = vpop.xlane.xlu0 %1513 }
0x1585   :  { %v1523_v2 = vpop.xlane.xlu1 %1522 }
0x1586   :  { %v1520_v16 = vpop.xlane.xlu0 %1519 }
0x1589   :  { %v1535_v57 = vpop.permute.xlu1 %1534 }
0x158a   :  { %v1537_v18 = vadd.f32 %v1535_v57, %v1505_v5  ;;  %v1538_v47 = vadd.f32 %v1535_v57, %v1508_v41  ;;  %v1539_v48 = vadd.f32 %v1535_v57, %v1511_v1  ;;  %v1540_v59 = vadd.f32 %v1535_v57, %v1514_v43  ;;  %v1526_v3 = vpop.xlane.xlu0 %1525 }
0x158b   :  { %v1541_v62 = vadd.f32 %v1535_v57, %v1517_v42  ;;  %v1542_v27 = vadd.f32 %v1535_v57, %v1520_v16  ;;  %v1543_v39 = vadd.f32 %v1535_v57, %v1523_v2  ;;  %v1544_v8 = vadd.f32 %v1535_v57, %v1526_v3 }
0x158c   :  { %v1558_v30 = vrot.slane %v1537_v18, %v1557_v44  ;;  %v1562_v34 = vrot.slane %v1538_v47, %v1557_v44  ;;  %v1566_v37 = vrot.slane %v1539_v48, %v1557_v44  ;;  %v1570_v51 = vrot.slane %v1540_v59, %v1557_v44 }
0x158d   :  { %v1574_v54 = vrot.slane %v1541_v62, %v1557_v44  ;;  %v1578_v10 = vrot.slane %v1542_v27, %v1557_v44  ;;  %v1582_v12 = vrot.slane %v1543_v39, %v1557_v44  ;;  %v1586_v14 = vrot.slane %v1544_v8, %v1557_v44 }
0x158e   :  { %v1588_v53 = vsel %vm1587_vm3, %v1562_v34, %v1558_v30 }
0x158f   :  { %v1590_v9 = vsel %vm1589_vm4, %v1566_v37, %v1588_v53 }
0x1590   :  { %v1592_v11 = vsel %vm1591_vm5, %v1570_v51, %v1590_v9 }
0x1591   :  { %v1594_v13 = vsel %vm1593_vm6, %v1574_v54, %v1592_v11 }
0x1592   :  { %v1596_v52 = vsel %vm1595_vm7, %v1578_v10, %v1594_v13 }
0x1593   :  { %v1598_v17 = vsel %vm1597_vm8, %v1582_v12, %v1596_v52 }
0x1594   :  { %v1600_v45 = vsel %vm1599_vm9, %v1586_v14, %v1598_v17 }
0x1595   :  { %1603 = vst.msk [vmem:[%s2549_s7] sm:$0xff] %vm1602_vm10, %v1600_v45 }

</bundles_post_ra>
